<compile_context>
chip_gen: v7x
topology: tpu7x:2x2x1
jax: 0.10.0
libtpu: 0.0.40
codegen_flags: <defaults>
</compile_context>

<pallas_src>
import functools

import jax
import jax.numpy as jnp
from jax import lax
from jax.experimental import pallas as pl
from jax.experimental.pallas import tpu as pltpu

_LN_EPS = 1e-5
_VMEM_LIMIT = 32 * 1024 * 1024  # <= physical VMEM on v5e/v6e (128 MiB) and v7x (64 MiB)

_PARALLEL_1D = pltpu.CompilerParams(
    dimension_semantics=("parallel",),
    vmem_limit_bytes=_VMEM_LIMIT,
)


def _row_tile(m, candidates=(512, 256, 128, 64, 32, 16, 8)):
    """Largest row tile (<=512) evenly dividing m; fall back to a single block."""
    for t in candidates:
        if m % t == 0:
            return t
    return m


def _layernorm_f32(y, g, b):
    """Row-wise LayerNorm (torch defaults: eps=1e-5, biased variance)."""
    mean = jnp.mean(y, axis=-1, keepdims=True)
    var = jnp.mean(jnp.square(y - mean), axis=-1, keepdims=True)
    return (y - mean) * lax.rsqrt(var + _LN_EPS) * g + b


# ----------------------------- Pallas kernels ------------------------------

def _proj_split_kernel(x_ref, w_ref, b_ref, *o_refs):
    # One MXU pass over the fused weight (N = n_split * d), then split the
    # output columns into the separate projection outputs (static slices).
    h = jnp.dot(x_ref[...], w_ref[...], preferred_element_type=jnp.float32)
    h = h + b_ref[...].astype(jnp.float32)
    d = o_refs[0].shape[-1]
    for i, o_ref in enumerate(o_refs):
        o_ref[...] = h[:, i * d:(i + 1) * d].astype(o_ref.dtype)


def _mha_fused_kernel(q_ref, k_ref, v_ref, wo_ref, bo_ref, res_ref, g_ref, b_ref,
                      o_ref, *, n_heads, head_dim):
    # One batch per grid step; all heads processed inside the kernel.
    # Computes LayerNorm(residual + (concat_h softmax(q_h k_h^T) v_h) @ Wo + bo).
    # Note: 1/sqrt(head_dim) is already folded into the Q projection weights.
    q = q_ref[0].astype(jnp.float32)        # (Lq, D)
    k = k_ref[0].astype(jnp.float32)        # (Lk, D)
    v = v_ref[0].astype(jnp.float32)        # (Lk, D)
    wo = wo_ref[...].astype(jnp.float32)    # (D, D)

    y = res_ref[0].astype(jnp.float32) + bo_ref[...].astype(jnp.float32)  # (Lq, D)
    for h in range(n_heads):
        lo, hi = h * head_dim, (h + 1) * head_dim
        qh, kh, vh = q[:, lo:hi], k[:, lo:hi], v[:, lo:hi]
        # q @ k^T without a physical transpose of k.
        s = lax.dot_general(qh, kh, (((1,), (1,)), ((), ())),
                            preferred_element_type=jnp.float32)          # (Lq, Lk)
        s = s - jnp.max(s, axis=-1, keepdims=True)
        p = jnp.exp(s)
        p = p * pl.reciprocal(jnp.sum(p, axis=-1, keepdims=True), approx=True)
        oh = jnp.dot(p, vh, preferred_element_type=jnp.float32)          # (Lq, dh)
        # Fused out-projection: accumulate this head's slice of Wo.
        y = y + jnp.dot(oh, wo[lo:hi, :], preferred_element_type=jnp.float32)

    yn = _layernorm_f32(y, g_ref[...].astype(jnp.float32), b_ref[...].astype(jnp.float32))
    o_ref[0] = yn.astype(o_ref.dtype)


def _ffn_ln_kernel(x_ref, w1_ref, b1_ref, w2_ref, b2_ref, g_ref, b_ref, o_ref):
    # o = LayerNorm(x + (relu(x @ w1 + b1) @ w2 + b2))   (Conv1d k=1 pair + residual + norm3)
    x = x_ref[...].astype(jnp.float32)
    h = jnp.dot(x, w1_ref[...], preferred_element_type=jnp.float32) + b1_ref[...]
    h = jnp.maximum(h, 0.0)
    y = x + jnp.dot(h, w2_ref[...], preferred_element_type=jnp.float32) + b2_ref[...]
    yn = _layernorm_f32(y, g_ref[...].astype(jnp.float32), b_ref[...].astype(jnp.float32))
    o_ref[...] = yn.astype(o_ref.dtype)


def _layernorm_kernel(x_ref, g_ref, b_ref, o_ref):
    x = x_ref[...].astype(jnp.float32)
    yn = _layernorm_f32(x, g_ref[...].astype(jnp.float32), b_ref[...].astype(jnp.float32))
    o_ref[...] = yn.astype(o_ref.dtype)


# ----------------------------- Pallas wrappers ------------------------------

def pallas_proj(x2d, w, b, n_split=1):
    """y = x @ w + b (single MXU pass); columns split into n_split equal outputs."""
    M, K = x2d.shape
    N = w.shape[1]
    d = N // n_split
    tm = _row_tile(M)
    cost = pl.CostEstimate(flops=2 * M * K * N, transcendentals=0,
                           bytes_accessed=4 * (M * K + K * N + N + M * N))
    in_specs = [pl.BlockSpec((tm, K), lambda i: (i, 0)),
                pl.BlockSpec((K, N), lambda i: (0, 0)),
                pl.BlockSpec((1, N), lambda i: (0, 0))]
    if n_split == 1:
        out_shape = jax.ShapeDtypeStruct((M, N), x2d.dtype)
        out_specs = pl.BlockSpec((tm, N), lambda i: (i, 0))
    else:
        out_shape = tuple(jax.ShapeDtypeStruct((M, d), x2d.dtype)
                          for _ in range(n_split))
        out_specs = [pl.BlockSpec((tm, d), lambda i: (i, 0))
                     for _ in range(n_split)]
    return pl.pallas_call(
        _proj_split_kernel,
        out_shape=out_shape,
        grid=(M // tm,),
        in_specs=in_specs,
        out_specs=out_specs,
        compiler_params=_PARALLEL_1D,
        cost_estimate=cost,
    )(x2d, w, b.reshape(1, N))


def pallas_mha_fused(q, k, v, wo, bo, res, gamma, beta, n_heads):
    """Multi-head attention (all heads per grid step) + out-proj + residual + LayerNorm."""
    B, Lq, D = q.shape
    Lk = k.shape[1]
    dh = D // n_heads
    kernel = functools.partial(_mha_fused_kernel, n_heads=n_heads, head_dim=dh)
    cost = pl.CostEstimate(
        flops=int(B * (4 * Lq * Lk * D + 2 * Lq * D * D)),
        transcendentals=int(B * n_heads * Lq * Lk),
        bytes_accessed=int(4 * (3 * B * Lq * D + 2 * B * Lk * D + D * D + 3 * D)),
    )
    return pl.pallas_call(
        kernel,
        out_shape=jax.ShapeDtypeStruct((B, Lq, D), res.dtype),
        grid=(B,),
        in_specs=[
            pl.BlockSpec((1, Lq, D), lambda b: (b, 0, 0)),   # q
            pl.BlockSpec((1, Lk, D), lambda b: (b, 0, 0)),   # k
            pl.BlockSpec((1, Lk, D), lambda b: (b, 0, 0)),   # v
            pl.BlockSpec((D, D), lambda b: (0, 0)),          # wo
            pl.BlockSpec((1, D), lambda b: (0, 0)),          # bo
            pl.BlockSpec((1, Lq, D), lambda b: (b, 0, 0)),   # residual
            pl.BlockSpec((1, D), lambda b: (0, 0)),          # ln gamma
            pl.BlockSpec((1, D), lambda b: (0, 0)),          # ln beta
        ],
        out_specs=pl.BlockSpec((1, Lq, D), lambda b: (b, 0, 0)),
        compiler_params=_PARALLEL_1D,
        cost_estimate=cost,
    )(q, k, v, wo, bo.reshape(1, D), res, gamma.reshape(1, D), beta.reshape(1, D))


def pallas_ffn_ln(x2d, w1, b1, w2, b2, gamma, beta):
    """LayerNorm(x + FFN(x)) fused; row-tiled over M."""
    M, D = x2d.shape
    F = w1.shape[1]
    tm = _row_tile(M)
    cost = pl.CostEstimate(flops=4 * M * D * F, transcendentals=0,
                           bytes_accessed=4 * (2 * M * D + 2 * D * F + F + 3 * D))
    return pl.pallas_call(
        _ffn_ln_kernel,
        out_shape=jax.ShapeDtypeStruct((M, D), x2d.dtype),
        grid=(M // tm,),
        in_specs=[pl.BlockSpec((tm, D), lambda i: (i, 0)),
                  pl.BlockSpec((D, F), lambda i: (0, 0)),
                  pl.BlockSpec((1, F), lambda i: (0, 0)),
                  pl.BlockSpec((F, D), lambda i: (0, 0)),
                  pl.BlockSpec((1, D), lambda i: (0, 0)),
                  pl.BlockSpec((1, D), lambda i: (0, 0)),
                  pl.BlockSpec((1, D), lambda i: (0, 0))],
        out_specs=pl.BlockSpec((tm, D), lambda i: (i, 0)),
        compiler_params=_PARALLEL_1D,
        cost_estimate=cost,
    )(x2d, w1, b1.reshape(1, F), w2, b2.reshape(1, D),
      gamma.reshape(1, D), beta.reshape(1, D))


def pallas_layernorm(x2d, gamma, beta):
    M, D = x2d.shape
    tm = _row_tile(M)
    return pl.pallas_call(
        _layernorm_kernel,
        out_shape=jax.ShapeDtypeStruct((M, D), x2d.dtype),
        grid=(M // tm,),
        in_specs=[pl.BlockSpec((tm, D), lambda i: (i, 0)),
                  pl.BlockSpec((1, D), lambda i: (0, 0)),
                  pl.BlockSpec((1, D), lambda i: (0, 0))],
        out_specs=pl.BlockSpec((tm, D), lambda i: (i, 0)),
        compiler_params=_PARALLEL_1D,
    )(x2d, gamma.reshape(1, D), beta.reshape(1, D))


# ----------------------------- model assembly ------------------------------

def decoder_layer(x, cross, p, n_heads):
    B, L, D = x.shape
    Lk = cross.shape[1]

    # x = norm1(x + self_attn(x, x, x))      (QKV fused, out-proj/residual/LN in-kernel)
    q, k, v = pallas_proj(x.reshape(B * L, D), p["self_wqkv"], p["self_bqkv"], n_split=3)
    x = pallas_mha_fused(q.reshape(B, L, D), k.reshape(B, L, D), v.reshape(B, L, D),
                         p["self_wo"], p["self_bo"], x,
                         p["norm1_g"], p["norm1_b"], n_heads)

    # x = norm2(x + cross_attn(x, cross, cross))   (KV fused, same fused epilogue)
    q = pallas_proj(x.reshape(B * L, D), p["cross_wq"], p["cross_bq"], n_split=1)
    k, v = pallas_proj(cross.reshape(B * Lk, D), p["cross_wkv"], p["cross_bkv"], n_split=2)
    x = pallas_mha_fused(q.reshape(B, L, D), k.reshape(B, Lk, D), v.reshape(B, Lk, D),
                         p["cross_wo"], p["cross_bo"], x,
                         p["norm2_g"], p["norm2_b"], n_heads)

    # x = norm3(x + conv2(relu(conv1(x^T)))^T)     (k=1 convs == per-token linears), fused
    x = pallas_ffn_ln(x.reshape(B * L, D), p["w1"], p["b1"], p["w2"], p["b2"],
                      p["norm3_g"], p["norm3_b"]).reshape(B, L, D)
    return x


def decoder_forward(x, cross, layer_params, norm_params, n_heads,
                    x_mask=None, cross_mask=None):
    # Decoder.forward: loop over layers, then optional final norm.
    # TODO(synk): x_mask / cross_mask not implemented (None path only).
    for p in layer_params:
        x = decoder_layer(x, cross, p, n_heads)
    if norm_params is not None:
        B, L, D = x.shape
        x = pallas_layernorm(x.reshape(B * L, D),
                             norm_params["g"], norm_params["b"]).reshape(B, L, D)
    return x


# ----------------------------- param init / fusing -------------------------

def init_attn_params(key, d_model):
    ks = jax.random.split(key, 4)
    mk = lambda k, shape: (0.02 * jax.random.normal(k, shape, jnp.float32))
    return {
        "wq": mk(ks[0], (d_model, d_model)), "bq": jnp.zeros((d_model,), jnp.float32),
        "wk": mk(ks[1], (d_model, d_model)), "bk": jnp.zeros((d_model,), jnp.float32),
        "wv": mk(ks[2], (d_model, d_model)), "bv": jnp.zeros((d_model,), jnp.float32),
        "wo": mk(ks[3], (d_model, d_model)), "bo": jnp.zeros((d_model,), jnp.float32),
    }


def init_layer_params(key, d_model, d_ff):
    ks = jax.random.split(key, 4)
    mk = lambda k, shape: (0.02 * jax.random.normal(k, shape, jnp.float32))
    return {
        "self_attn": init_attn_params(ks[0], d_model),
        "cross_attn": init_attn_params(ks[1], d_model),
        "w1": mk(ks[2], (d_model, d_ff)), "b1": jnp.zeros((d_ff,), jnp.float32),
        "w2": mk(ks[3], (d_ff, d_model)), "b2": jnp.zeros((d_model,), jnp.float32),
        "norm1_g": jnp.ones((d_model,), jnp.float32), "norm1_b": jnp.zeros((d_model,), jnp.float32),
        "norm2_g": jnp.ones((d_model,), jnp.float32), "norm2_b": jnp.zeros((d_model,), jnp.float32),
        "norm3_g": jnp.ones((d_model,), jnp.float32), "norm3_b": jnp.zeros((d_model,), jnp.float32),
    }


def fuse_layer_params(p, n_heads, d_model):
    """Concat Q/K/V weights for single-pass projections and fold 1/sqrt(dh) into Q."""
    dh = d_model // n_heads
    scale = 1.0 / float(dh) ** 0.5
    sa, ca = p["self_attn"], p["cross_attn"]
    return {
        "self_wqkv": jnp.concatenate([sa["wq"] * scale, sa["wk"], sa["wv"]], axis=1),
        "self_bqkv": jnp.concatenate([sa["bq"] * scale, sa["bk"], sa["bv"]], axis=0),
        "self_wo": sa["wo"], "self_bo": sa["bo"],
        "cross_wq": ca["wq"] * scale, "cross_bq": ca["bq"] * scale,
        "cross_wkv": jnp.concatenate([ca["wk"], ca["wv"]], axis=1),
        "cross_bkv": jnp.concatenate([ca["bk"], ca["bv"]], axis=0),
        "cross_wo": ca["wo"], "cross_bo": ca["bo"],
        "w1": p["w1"], "b1": p["b1"], "w2": p["w2"], "b2": p["b2"],
        "norm1_g": p["norm1_g"], "norm1_b": p["norm1_b"],
        "norm2_g": p["norm2_g"], "norm2_b": p["norm2_b"],
        "norm3_g": p["norm3_g"], "norm3_b": p["norm3_b"],
    }


# --------------------------------- main -------------------------------------

if __name__ == "__main__":
    B, L_dec, L_enc = 2, 8, 8
    d_model, n_heads, d_ff, n_layers = 32, 4, 64, 2

    key = jax.random.PRNGKey(0)
    k_x, k_c, *k_layers = jax.random.split(key, 2 + n_layers)

    x = jax.random.normal(k_x, (B, L_dec, d_model), jnp.float32)
    cross = jax.random.normal(k_c, (B, L_enc, d_model), jnp.float32)

    raw_layer_params = [init_layer_params(k, d_model, d_ff) for k in k_layers]
    layer_params = [fuse_layer_params(p, n_heads, d_model) for p in raw_layer_params]
    norm_params = {"g": jnp.ones((d_model,), jnp.float32),
                   "b": jnp.zeros((d_model,), jnp.float32)}

    fwd = jax.jit(functools.partial(decoder_forward, n_heads=n_heads))
    out = fwd(x, cross, layer_params, norm_params)
    out = jax.block_until_ready(out)

    assert out.shape == (B, L_dec, d_model)
    assert out.dtype == jnp.float32
    assert bool(jnp.all(jnp.isfinite(out)))
    print("KERNEL_OK")
</pallas_src>

<mosaic_0001>
module attributes {stable_mosaic.version = 11 : i64} {
  func.func @_mha_fused_kernel(%arg0: i32, %arg1: memref<1x8x32xf32, #tpu.memory_space<vmem>>, %arg2: memref<1x8x32xf32, #tpu.memory_space<vmem>>, %arg3: memref<1x8x32xf32, #tpu.memory_space<vmem>>, %arg4: memref<32x32xf32, #tpu.memory_space<vmem>>, %arg5: memref<1x32xf32, #tpu.memory_space<vmem>>, %arg6: memref<1x8x32xf32, #tpu.memory_space<vmem>>, %arg7: memref<1x32xf32, #tpu.memory_space<vmem>>, %arg8: memref<1x32xf32, #tpu.memory_space<vmem>>, %arg9: memref<1x8x32xf32, #tpu.memory_space<vmem>>) attributes {dimension_semantics = [#tpu.dimension_semantics<parallel>], iteration_bounds = array<i64: 2>, scalar_prefetch = 0 : i64, scratch_operands = 0 : i64, tpu.core_type = #tpu.core_type<tc>, window_params = [{transform_indices = @transform_0, window_bounds = array<i64: 1, 8, 32>}, {transform_indices = @transform_1, window_bounds = array<i64: 1, 8, 32>}, {transform_indices = @transform_2, window_bounds = array<i64: 1, 8, 32>}, {pipeline_mode = #tpu.pipeline_mode<synchronous>, transform_indices = @transform_3, window_bounds = array<i64: 32, 32>}, {pipeline_mode = #tpu.pipeline_mode<synchronous>, transform_indices = @transform_4, window_bounds = array<i64: 1, 32>}, {transform_indices = @transform_5, window_bounds = array<i64: 1, 8, 32>}, {pipeline_mode = #tpu.pipeline_mode<synchronous>, transform_indices = @transform_6, window_bounds = array<i64: 1, 32>}, {pipeline_mode = #tpu.pipeline_mode<synchronous>, transform_indices = @transform_7, window_bounds = array<i64: 1, 32>}, {transform_indices = @transform_8, window_bounds = array<i64: 1, 8, 32>}]} {
    %c0 = arith.constant 0 : index
    %c0_0 = arith.constant 0 : index
    %c0_1 = arith.constant 0 : index
    %0 = vector.load %arg1[%c0, %c0_0, %c0_1] : memref<1x8x32xf32, #tpu.memory_space<vmem>>, vector<1x8x32xf32>
    %1 = vector.shape_cast %0 : vector<1x8x32xf32> to vector<8x32xf32>
    %c0_2 = arith.constant 0 : index
    %c0_3 = arith.constant 0 : index
    %c0_4 = arith.constant 0 : index
    %2 = vector.load %arg2[%c0_2, %c0_3, %c0_4] : memref<1x8x32xf32, #tpu.memory_space<vmem>>, vector<1x8x32xf32>
    %3 = vector.shape_cast %2 : vector<1x8x32xf32> to vector<8x32xf32>
    %c0_5 = arith.constant 0 : index
    %c0_6 = arith.constant 0 : index
    %c0_7 = arith.constant 0 : index
    %4 = vector.load %arg3[%c0_5, %c0_6, %c0_7] : memref<1x8x32xf32, #tpu.memory_space<vmem>>, vector<1x8x32xf32>
    %5 = vector.shape_cast %4 : vector<1x8x32xf32> to vector<8x32xf32>
    %c0_8 = arith.constant 0 : index
    %c0_9 = arith.constant 0 : index
    %6 = vector.load %arg4[%c0_8, %c0_9] : memref<32x32xf32, #tpu.memory_space<vmem>>, vector<32x32xf32>
    %c0_10 = arith.constant 0 : index
    %c0_11 = arith.constant 0 : index
    %c0_12 = arith.constant 0 : index
    %7 = vector.load %arg6[%c0_10, %c0_11, %c0_12] : memref<1x8x32xf32, #tpu.memory_space<vmem>>, vector<1x8x32xf32>
    %8 = vector.shape_cast %7 : vector<1x8x32xf32> to vector<8x32xf32>
    %c0_13 = arith.constant 0 : index
    %c0_14 = arith.constant 0 : index
    %9 = vector.load %arg5[%c0_13, %c0_14] : memref<1x32xf32, #tpu.memory_space<vmem>>, vector<1x32xf32>
    %10 = vector.broadcast %9 : vector<1x32xf32> to vector<8x32xf32>
    %11 = arith.addf %8, %10 : vector<8x32xf32>
    %12 = vector.extract_strided_slice %1 {offsets = [0, 0], sizes = [8, 8], strides = [1, 1]} : vector<8x32xf32> to vector<8x8xf32>
    %13 = vector.extract_strided_slice %3 {offsets = [0, 0], sizes = [8, 8], strides = [1, 1]} : vector<8x32xf32> to vector<8x8xf32>
    %14 = vector.extract_strided_slice %5 {offsets = [0, 0], sizes = [8, 8], strides = [1, 1]} : vector<8x32xf32> to vector<8x8xf32>
    %cst = arith.constant dense<0.000000e+00> : vector<8x8xf32>
    %15 = tpu.matmul %12, %13, %cst {dimension_numbers = #tpu.dot_dimension_numbers<[1], [1], [0], [0], [0, 0, 1, 0], [], []>} : vector<8x8xf32>, vector<8x8xf32>, vector<8x8xf32> -> vector<8x8xf32>
    %cst_15 = arith.constant dense<0xFF800000> : vector<8xf32>
    %16 = vector.multi_reduction <maximumf>, %15, %cst_15 [1] : vector<8x8xf32> to vector<8xf32>
    %17 = vector.shape_cast %16 : vector<8xf32> to vector<8x1xf32>
    %18 = vector.broadcast %17 : vector<8x1xf32> to vector<8x8xf32>
    %19 = arith.subf %15, %18 : vector<8x8xf32>
    %20 = math.exp %19 : vector<8x8xf32>
    %cst_16 = arith.constant dense<0.000000e+00> : vector<8xf32>
    %21 = vector.multi_reduction <add>, %20, %cst_16 [1] : vector<8x8xf32> to vector<8xf32>
    %22 = vector.shape_cast %21 : vector<8xf32> to vector<8x1xf32>
    %23 = tpu.reciprocal %22 {approx = true} : vector<8x1xf32> -> vector<8x1xf32>
    %24 = vector.broadcast %23 : vector<8x1xf32> to vector<8x8xf32>
    %25 = arith.mulf %20, %24 : vector<8x8xf32>
    %cst_17 = arith.constant dense<0.000000e+00> : vector<8x8xf32>
    %26 = tpu.matmul %25, %14, %cst_17 {dimension_numbers = #tpu.dot_dimension_numbers<[1], [0], [0], [1], [0, 0, 1, 1], [], []>} : vector<8x8xf32>, vector<8x8xf32>, vector<8x8xf32> -> vector<8x8xf32>
    %27 = vector.extract_strided_slice %6 {offsets = [0, 0], sizes = [8, 32], strides = [1, 1]} : vector<32x32xf32> to vector<8x32xf32>
    %cst_18 = arith.constant dense<0.000000e+00> : vector<8x32xf32>
    %28 = tpu.matmul %26, %27, %cst_18 {dimension_numbers = #tpu.dot_dimension_numbers<[1], [0], [0], [1], [0, 0, 1, 1], [], []>} : vector<8x8xf32>, vector<8x32xf32>, vector<8x32xf32> -> vector<8x32xf32>
    %29 = arith.addf %11, %28 : vector<8x32xf32>
    %30 = vector.extract_strided_slice %1 {offsets = [0, 8], sizes = [8, 8], strides = [1, 1]} : vector<8x32xf32> to vector<8x8xf32>
    %31 = vector.extract_strided_slice %3 {offsets = [0, 8], sizes = [8, 8], strides = [1, 1]} : vector<8x32xf32> to vector<8x8xf32>
    %32 = vector.extract_strided_slice %5 {offsets = [0, 8], sizes = [8, 8], strides = [1, 1]} : vector<8x32xf32> to vector<8x8xf32>
    %cst_19 = arith.constant dense<0.000000e+00> : vector<8x8xf32>
    %33 = tpu.matmul %30, %31, %cst_19 {dimension_numbers = #tpu.dot_dimension_numbers<[1], [1], [0], [0], [0, 0, 1, 0], [], []>} : vector<8x8xf32>, vector<8x8xf32>, vector<8x8xf32> -> vector<8x8xf32>
    %cst_20 = arith.constant dense<0xFF800000> : vector<8xf32>
    %34 = vector.multi_reduction <maximumf>, %33, %cst_20 [1] : vector<8x8xf32> to vector<8xf32>
    %35 = vector.shape_cast %34 : vector<8xf32> to vector<8x1xf32>
    %36 = vector.broadcast %35 : vector<8x1xf32> to vector<8x8xf32>
    %37 = arith.subf %33, %36 : vector<8x8xf32>
    %38 = math.exp %37 : vector<8x8xf32>
    %cst_21 = arith.constant dense<0.000000e+00> : vector<8xf32>
    %39 = vector.multi_reduction <add>, %38, %cst_21 [1] : vector<8x8xf32> to vector<8xf32>
    %40 = vector.shape_cast %39 : vector<8xf32> to vector<8x1xf32>
    %41 = tpu.reciprocal %40 {approx = true} : vector<8x1xf32> -> vector<8x1xf32>
    %42 = vector.broadcast %41 : vector<8x1xf32> to vector<8x8xf32>
    %43 = arith.mulf %38, %42 : vector<8x8xf32>
    %cst_22 = arith.constant dense<0.000000e+00> : vector<8x8xf32>
    %44 = tpu.matmul %43, %32, %cst_22 {dimension_numbers = #tpu.dot_dimension_numbers<[1], [0], [0], [1], [0, 0, 1, 1], [], []>} : vector<8x8xf32>, vector<8x8xf32>, vector<8x8xf32> -> vector<8x8xf32>
    %45 = vector.extract_strided_slice %6 {offsets = [8, 0], sizes = [8, 32], strides = [1, 1]} : vector<32x32xf32> to vector<8x32xf32>
    %cst_23 = arith.constant dense<0.000000e+00> : vector<8x32xf32>
    %46 = tpu.matmul %44, %45, %cst_23 {dimension_numbers = #tpu.dot_dimension_numbers<[1], [0], [0], [1], [0, 0, 1, 1], [], []>} : vector<8x8xf32>, vector<8x32xf32>, vector<8x32xf32> -> vector<8x32xf32>
    %47 = arith.addf %29, %46 : vector<8x32xf32>
    %48 = vector.extract_strided_slice %1 {offsets = [0, 16], sizes = [8, 8], strides = [1, 1]} : vector<8x32xf32> to vector<8x8xf32>
    %49 = vector.extract_strided_slice %3 {offsets = [0, 16], sizes = [8, 8], strides = [1, 1]} : vector<8x32xf32> to vector<8x8xf32>
    %50 = vector.extract_strided_slice %5 {offsets = [0, 16], sizes = [8, 8], strides = [1, 1]} : vector<8x32xf32> to vector<8x8xf32>
    %cst_24 = arith.constant dense<0.000000e+00> : vector<8x8xf32>
    %51 = tpu.matmul %48, %49, %cst_24 {dimension_numbers = #tpu.dot_dimension_numbers<[1], [1], [0], [0], [0, 0, 1, 0], [], []>} : vector<8x8xf32>, vector<8x8xf32>, vector<8x8xf32> -> vector<8x8xf32>
    %cst_25 = arith.constant dense<0xFF800000> : vector<8xf32>
    %52 = vector.multi_reduction <maximumf>, %51, %cst_25 [1] : vector<8x8xf32> to vector<8xf32>
    %53 = vector.shape_cast %52 : vector<8xf32> to vector<8x1xf32>
    %54 = vector.broadcast %53 : vector<8x1xf32> to vector<8x8xf32>
    %55 = arith.subf %51, %54 : vector<8x8xf32>
    %56 = math.exp %55 : vector<8x8xf32>
    %cst_26 = arith.constant dense<0.000000e+00> : vector<8xf32>
    %57 = vector.multi_reduction <add>, %56, %cst_26 [1] : vector<8x8xf32> to vector<8xf32>
    %58 = vector.shape_cast %57 : vector<8xf32> to vector<8x1xf32>
    %59 = tpu.reciprocal %58 {approx = true} : vector<8x1xf32> -> vector<8x1xf32>
    %60 = vector.broadcast %59 : vector<8x1xf32> to vector<8x8xf32>
    %61 = arith.mulf %56, %60 : vector<8x8xf32>
    %cst_27 = arith.constant dense<0.000000e+00> : vector<8x8xf32>
    %62 = tpu.matmul %61, %50, %cst_27 {dimension_numbers = #tpu.dot_dimension_numbers<[1], [0], [0], [1], [0, 0, 1, 1], [], []>} : vector<8x8xf32>, vector<8x8xf32>, vector<8x8xf32> -> vector<8x8xf32>
    %63 = vector.extract_strided_slice %6 {offsets = [16, 0], sizes = [8, 32], strides = [1, 1]} : vector<32x32xf32> to vector<8x32xf32>
    %cst_28 = arith.constant dense<0.000000e+00> : vector<8x32xf32>
    %64 = tpu.matmul %62, %63, %cst_28 {dimension_numbers = #tpu.dot_dimension_numbers<[1], [0], [0], [1], [0, 0, 1, 1], [], []>} : vector<8x8xf32>, vector<8x32xf32>, vector<8x32xf32> -> vector<8x32xf32>
    %65 = arith.addf %47, %64 : vector<8x32xf32>
    %66 = vector.extract_strided_slice %1 {offsets = [0, 24], sizes = [8, 8], strides = [1, 1]} : vector<8x32xf32> to vector<8x8xf32>
    %67 = vector.extract_strided_slice %3 {offsets = [0, 24], sizes = [8, 8], strides = [1, 1]} : vector<8x32xf32> to vector<8x8xf32>
    %68 = vector.extract_strided_slice %5 {offsets = [0, 24], sizes = [8, 8], strides = [1, 1]} : vector<8x32xf32> to vector<8x8xf32>
    %cst_29 = arith.constant dense<0.000000e+00> : vector<8x8xf32>
    %69 = tpu.matmul %66, %67, %cst_29 {dimension_numbers = #tpu.dot_dimension_numbers<[1], [1], [0], [0], [0, 0, 1, 0], [], []>} : vector<8x8xf32>, vector<8x8xf32>, vector<8x8xf32> -> vector<8x8xf32>
    %cst_30 = arith.constant dense<0xFF800000> : vector<8xf32>
    %70 = vector.multi_reduction <maximumf>, %69, %cst_30 [1] : vector<8x8xf32> to vector<8xf32>
    %71 = vector.shape_cast %70 : vector<8xf32> to vector<8x1xf32>
    %72 = vector.broadcast %71 : vector<8x1xf32> to vector<8x8xf32>
    %73 = arith.subf %69, %72 : vector<8x8xf32>
    %74 = math.exp %73 : vector<8x8xf32>
    %cst_31 = arith.constant dense<0.000000e+00> : vector<8xf32>
    %75 = vector.multi_reduction <add>, %74, %cst_31 [1] : vector<8x8xf32> to vector<8xf32>
    %76 = vector.shape_cast %75 : vector<8xf32> to vector<8x1xf32>
    %77 = tpu.reciprocal %76 {approx = true} : vector<8x1xf32> -> vector<8x1xf32>
    %78 = vector.broadcast %77 : vector<8x1xf32> to vector<8x8xf32>
    %79 = arith.mulf %74, %78 : vector<8x8xf32>
    %cst_32 = arith.constant dense<0.000000e+00> : vector<8x8xf32>
    %80 = tpu.matmul %79, %68, %cst_32 {dimension_numbers = #tpu.dot_dimension_numbers<[1], [0], [0], [1], [0, 0, 1, 1], [], []>} : vector<8x8xf32>, vector<8x8xf32>, vector<8x8xf32> -> vector<8x8xf32>
    %81 = vector.extract_strided_slice %6 {offsets = [24, 0], sizes = [8, 32], strides = [1, 1]} : vector<32x32xf32> to vector<8x32xf32>
    %cst_33 = arith.constant dense<0.000000e+00> : vector<8x32xf32>
    %82 = tpu.matmul %80, %81, %cst_33 {dimension_numbers = #tpu.dot_dimension_numbers<[1], [0], [0], [1], [0, 0, 1, 1], [], []>} : vector<8x8xf32>, vector<8x32xf32>, vector<8x32xf32> -> vector<8x32xf32>
    %83 = arith.addf %65, %82 : vector<8x32xf32>
    %c0_34 = arith.constant 0 : index
    %c0_35 = arith.constant 0 : index
    %84 = vector.load %arg7[%c0_34, %c0_35] : memref<1x32xf32, #tpu.memory_space<vmem>>, vector<1x32xf32>
    %c0_36 = arith.constant 0 : index
    %c0_37 = arith.constant 0 : index
    %85 = vector.load %arg8[%c0_36, %c0_37] : memref<1x32xf32, #tpu.memory_space<vmem>>, vector<1x32xf32>
    %cst_38 = arith.constant dense<0.000000e+00> : vector<8xf32>
    %86 = vector.multi_reduction <add>, %83, %cst_38 [1] : vector<8x32xf32> to vector<8xf32>
    %87 = vector.shape_cast %86 : vector<8xf32> to vector<8x1xf32>
    %cst_39 = arith.constant 3.200000e+01 : f32
    %88 = vector.broadcast %cst_39 : f32 to vector<8x1xf32>
    %89 = arith.divf %87, %88 : vector<8x1xf32>
    %90 = vector.broadcast %89 : vector<8x1xf32> to vector<8x32xf32>
    %91 = arith.subf %83, %90 : vector<8x32xf32>
    %92 = arith.mulf %91, %91 : vector<8x32xf32>
    %cst_40 = arith.constant dense<0.000000e+00> : vector<8xf32>
    %93 = vector.multi_reduction <add>, %92, %cst_40 [1] : vector<8x32xf32> to vector<8xf32>
    %94 = vector.shape_cast %93 : vector<8xf32> to vector<8x1xf32>
    %cst_41 = arith.constant 3.200000e+01 : f32
    %95 = vector.broadcast %cst_41 : f32 to vector<8x1xf32>
    %96 = arith.divf %94, %95 : vector<8x1xf32>
    %97 = vector.broadcast %89 : vector<8x1xf32> to vector<8x32xf32>
    %98 = arith.subf %83, %97 : vector<8x32xf32>
    %cst_42 = arith.constant 9.99999974E-6 : f32
    %99 = vector.broadcast %cst_42 : f32 to vector<8x1xf32>
    %100 = arith.addf %96, %99 : vector<8x1xf32>
    %101 = math.rsqrt %100 : vector<8x1xf32>
    %102 = vector.broadcast %101 : vector<8x1xf32> to vector<8x32xf32>
    %103 = arith.mulf %98, %102 : vector<8x32xf32>
    %104 = vector.broadcast %84 : vector<1x32xf32> to vector<8x32xf32>
    %105 = arith.mulf %103, %104 : vector<8x32xf32>
    %106 = vector.broadcast %85 : vector<1x32xf32> to vector<8x32xf32>
    %107 = arith.addf %105, %106 : vector<8x32xf32>
    %c0_43 = arith.constant 0 : index
    %c0_44 = arith.constant 0 : index
    %c0_45 = arith.constant 0 : index
    %108 = vector.load %arg9[%c0_43, %c0_44, %c0_45] : memref<1x8x32xf32, #tpu.memory_space<vmem>>, vector<1x8x32xf32>
    %109 = vector.shape_cast %108 : vector<1x8x32xf32> to vector<8x32xf32>
    %110 = vector.shape_cast %107 : vector<8x32xf32> to vector<1x8x32xf32>
    tpu.vector_store %arg9[%c0_43, %c0_44, %c0_45], %110 {strides = array<i32>} : memref<1x8x32xf32, #tpu.memory_space<vmem>>, vector<1x8x32xf32>,
    return
  }
  func.func @transform_0(%arg0: i32) -> (i32, i32, i32) {
    %c0_i32 = arith.constant 0 : i32
    %c0_i32_0 = arith.constant 0 : i32
    %c0_i32_1 = arith.constant 0 : i32
    return %arg0, %c0_i32, %c0_i32_0 : i32, i32, i32
  }
  func.func @transform_1(%arg0: i32) -> (i32, i32, i32) {
    %c0_i32 = arith.constant 0 : i32
    %c0_i32_0 = arith.constant 0 : i32
    %c0_i32_1 = arith.constant 0 : i32
    return %arg0, %c0_i32, %c0_i32_0 : i32, i32, i32
  }
  func.func @transform_2(%arg0: i32) -> (i32, i32, i32) {
    %c0_i32 = arith.constant 0 : i32
    %c0_i32_0 = arith.constant 0 : i32
    %c0_i32_1 = arith.constant 0 : i32
    return %arg0, %c0_i32, %c0_i32_0 : i32, i32, i32
  }
  func.func @transform_3(%arg0: i32) -> (i32, i32) {
    %c0_i32 = arith.constant 0 : i32
    %c0_i32_0 = arith.constant 0 : i32
    %c0_i32_1 = arith.constant 0 : i32
    return %c0_i32, %c0_i32_0 : i32, i32
  }
  func.func @transform_4(%arg0: i32) -> (i32, i32) {
    %c0_i32 = arith.constant 0 : i32
    %c0_i32_0 = arith.constant 0 : i32
    %c0_i32_1 = arith.constant 0 : i32
    return %c0_i32, %c0_i32_0 : i32, i32
  }
  func.func @transform_5(%arg0: i32) -> (i32, i32, i32) {
    %c0_i32 = arith.constant 0 : i32
    %c0_i32_0 = arith.constant 0 : i32
    %c0_i32_1 = arith.constant 0 : i32
    return %arg0, %c0_i32, %c0_i32_0 : i32, i32, i32
  }
  func.func @transform_6(%arg0: i32) -> (i32, i32) {
    %c0_i32 = arith.constant 0 : i32
    %c0_i32_0 = arith.constant 0 : i32
    %c0_i32_1 = arith.constant 0 : i32
    return %c0_i32, %c0_i32_0 : i32, i32
  }
  func.func @transform_7(%arg0: i32) -> (i32, i32) {
    %c0_i32 = arith.constant 0 : i32
    %c0_i32_0 = arith.constant 0 : i32
    %c0_i32_1 = arith.constant 0 : i32
    return %c0_i32, %c0_i32_0 : i32, i32
  }
  func.func @transform_8(%arg0: i32) -> (i32, i32, i32) {
    %c0_i32 = arith.constant 0 : i32
    %c0_i32_0 = arith.constant 0 : i32
    %c0_i32_1 = arith.constant 0 : i32
    return %arg0, %c0_i32, %c0_i32_0 : i32, i32, i32
  }
}

module attributes {stable_mosaic.version = 11 : i64} {
  func.func @_proj_split_kernel(%arg0: i32, %arg1: memref<16x32xf32, #tpu.memory_space<vmem>>, %arg2: memref<32x96xf32, #tpu.memory_space<vmem>>, %arg3: memref<1x96xf32, #tpu.memory_space<vmem>>, %arg4: memref<16x32xf32, #tpu.memory_space<vmem>>, %arg5: memref<16x32xf32, #tpu.memory_space<vmem>>, %arg6: memref<16x32xf32, #tpu.memory_space<vmem>>) attributes {dimension_semantics = [#tpu.dimension_semantics<parallel>], iteration_bounds = array<i64: 1>, scalar_prefetch = 0 : i64, scratch_operands = 0 : i64, tpu.core_type = #tpu.core_type<tc>, window_params = [{transform_indices = @transform_0, window_bounds = array<i64: 16, 32>}, {pipeline_mode = #tpu.pipeline_mode<synchronous>, transform_indices = @transform_1, window_bounds = array<i64: 32, 96>}, {pipeline_mode = #tpu.pipeline_mode<synchronous>, transform_indices = @transform_2, window_bounds = array<i64: 1, 96>}, {transform_indices = @transform_3, window_bounds = array<i64: 16, 32>}, {transform_indices = @transform_4, window_bounds = array<i64: 16, 32>}, {transform_indices = @transform_5, window_bounds = array<i64: 16, 32>}]} {
    %c0 = arith.constant 0 : index
    %c0_0 = arith.constant 0 : index
    %0 = vector.load %arg1[%c0, %c0_0] : memref<16x32xf32, #tpu.memory_space<vmem>>, vector<16x32xf32>
    %c0_1 = arith.constant 0 : index
    %c0_2 = arith.constant 0 : index
    %1 = vector.load %arg2[%c0_1, %c0_2] : memref<32x96xf32, #tpu.memory_space<vmem>>, vector<32x96xf32>
    %cst = arith.constant dense<0.000000e+00> : vector<16x96xf32>
    %2 = tpu.matmul %0, %1, %cst {dimension_numbers = #tpu.dot_dimension_numbers<[1], [0], [0], [1], [0, 0, 1, 1], [], []>} : vector<16x32xf32>, vector<32x96xf32>, vector<16x96xf32> -> vector<16x96xf32>
    %c0_3 = arith.constant 0 : index
    %c0_4 = arith.constant 0 : index
    %3 = vector.load %arg3[%c0_3, %c0_4] : memref<1x96xf32, #tpu.memory_space<vmem>>, vector<1x96xf32>
    %4 = vector.broadcast %3 : vector<1x96xf32> to vector<16x96xf32>
    %5 = arith.addf %2, %4 : vector<16x96xf32>
    %6 = vector.extract_strided_slice %5 {offsets = [0, 0], sizes = [16, 32], strides = [1, 1]} : vector<16x96xf32> to vector<16x32xf32>
    %c0_5 = arith.constant 0 : index
    %c0_6 = arith.constant 0 : index
    %7 = vector.load %arg4[%c0_5, %c0_6] : memref<16x32xf32, #tpu.memory_space<vmem>>, vector<16x32xf32>
    tpu.vector_store %arg4[%c0_5, %c0_6], %6 {strides = array<i32>} : memref<16x32xf32, #tpu.memory_space<vmem>>, vector<16x32xf32>,
    %8 = vector.extract_strided_slice %5 {offsets = [0, 32], sizes = [16, 32], strides = [1, 1]} : vector<16x96xf32> to vector<16x32xf32>
    %c0_7 = arith.constant 0 : index
    %c0_8 = arith.constant 0 : index
    %9 = vector.load %arg5[%c0_7, %c0_8] : memref<16x32xf32, #tpu.memory_space<vmem>>, vector<16x32xf32>
    tpu.vector_store %arg5[%c0_7, %c0_8], %8 {strides = array<i32>} : memref<16x32xf32, #tpu.memory_space<vmem>>, vector<16x32xf32>,
    %10 = vector.extract_strided_slice %5 {offsets = [0, 64], sizes = [16, 32], strides = [1, 1]} : vector<16x96xf32> to vector<16x32xf32>
    %c0_9 = arith.constant 0 : index
    %c0_10 = arith.constant 0 : index
    %11 = vector.load %arg6[%c0_9, %c0_10] : memref<16x32xf32, #tpu.memory_space<vmem>>, vector<16x32xf32>
    tpu.vector_store %arg6[%c0_9, %c0_10], %10 {strides = array<i32>} : memref<16x32xf32, #tpu.memory_space<vmem>>, vector<16x32xf32>,
    return
  }
  func.func @transform_0(%arg0: i32) -> (i32, i32) {
    %c0_i32 = arith.constant 0 : i32
    %c0_i32_0 = arith.constant 0 : i32
    return %arg0, %c0_i32 : i32, i32
  }
  func.func @transform_1(%arg0: i32) -> (i32, i32) {
    %c0_i32 = arith.constant 0 : i32
    %c0_i32_0 = arith.constant 0 : i32
    %c0_i32_1 = arith.constant 0 : i32
    return %c0_i32, %c0_i32_0 : i32, i32
  }
  func.func @transform_2(%arg0: i32) -> (i32, i32) {
    %c0_i32 = arith.constant 0 : i32
    %c0_i32_0 = arith.constant 0 : i32
    %c0_i32_1 = arith.constant 0 : i32
    return %c0_i32, %c0_i32_0 : i32, i32
  }
  func.func @transform_3(%arg0: i32) -> (i32, i32) {
    %c0_i32 = arith.constant 0 : i32
    %c0_i32_0 = arith.constant 0 : i32
    return %arg0, %c0_i32 : i32, i32
  }
  func.func @transform_4(%arg0: i32) -> (i32, i32) {
    %c0_i32 = arith.constant 0 : i32
    %c0_i32_0 = arith.constant 0 : i32
    return %arg0, %c0_i32 : i32, i32
  }
  func.func @transform_5(%arg0: i32) -> (i32, i32) {
    %c0_i32 = arith.constant 0 : i32
    %c0_i32_0 = arith.constant 0 : i32
    return %arg0, %c0_i32 : i32, i32
  }
}

module attributes {stable_mosaic.version = 11 : i64} {
  func.func @_proj_split_kernel(%arg0: i32, %arg1: memref<16x32xf32, #tpu.memory_space<vmem>>, %arg2: memref<32x32xf32, #tpu.memory_space<vmem>>, %arg3: memref<1x32xf32, #tpu.memory_space<vmem>>, %arg4: memref<16x32xf32, #tpu.memory_space<vmem>>) attributes {dimension_semantics = [#tpu.dimension_semantics<parallel>], iteration_bounds = array<i64: 1>, scalar_prefetch = 0 : i64, scratch_operands = 0 : i64, tpu.core_type = #tpu.core_type<tc>, window_params = [{transform_indices = @transform_0, window_bounds = array<i64: 16, 32>}, {pipeline_mode = #tpu.pipeline_mode<synchronous>, transform_indices = @transform_1, window_bounds = array<i64: 32, 32>}, {pipeline_mode = #tpu.pipeline_mode<synchronous>, transform_indices = @transform_2, window_bounds = array<i64: 1, 32>}, {transform_indices = @transform_3, window_bounds = array<i64: 16, 32>}]} {
    %c0 = arith.constant 0 : index
    %c0_0 = arith.constant 0 : index
    %0 = vector.load %arg1[%c0, %c0_0] : memref<16x32xf32, #tpu.memory_space<vmem>>, vector<16x32xf32>
    %c0_1 = arith.constant 0 : index
    %c0_2 = arith.constant 0 : index
    %1 = vector.load %arg2[%c0_1, %c0_2] : memref<32x32xf32, #tpu.memory_space<vmem>>, vector<32x32xf32>
    %cst = arith.constant dense<0.000000e+00> : vector<16x32xf32>
    %2 = tpu.matmul %0, %1, %cst {dimension_numbers = #tpu.dot_dimension_numbers<[1], [0], [0], [1], [0, 0, 1, 1], [], []>} : vector<16x32xf32>, vector<32x32xf32>, vector<16x32xf32> -> vector<16x32xf32>
    %c0_3 = arith.constant 0 : index
    %c0_4 = arith.constant 0 : index
    %3 = vector.load %arg3[%c0_3, %c0_4] : memref<1x32xf32, #tpu.memory_space<vmem>>, vector<1x32xf32>
    %4 = vector.broadcast %3 : vector<1x32xf32> to vector<16x32xf32>
    %5 = arith.addf %2, %4 : vector<16x32xf32>
    %c0_5 = arith.constant 0 : index
    %c0_6 = arith.constant 0 : index
    %6 = vector.load %arg4[%c0_5, %c0_6] : memref<16x32xf32, #tpu.memory_space<vmem>>, vector<16x32xf32>
    tpu.vector_store %arg4[%c0_5, %c0_6], %5 {strides = array<i32>} : memref<16x32xf32, #tpu.memory_space<vmem>>, vector<16x32xf32>,
    return
  }
  func.func @transform_0(%arg0: i32) -> (i32, i32) {
    %c0_i32 = arith.constant 0 : i32
    %c0_i32_0 = arith.constant 0 : i32
    return %arg0, %c0_i32 : i32, i32
  }
  func.func @transform_1(%arg0: i32) -> (i32, i32) {
    %c0_i32 = arith.constant 0 : i32
    %c0_i32_0 = arith.constant 0 : i32
    %c0_i32_1 = arith.constant 0 : i32
    return %c0_i32, %c0_i32_0 : i32, i32
  }
  func.func @transform_2(%arg0: i32) -> (i32, i32) {
    %c0_i32 = arith.constant 0 : i32
    %c0_i32_0 = arith.constant 0 : i32
    %c0_i32_1 = arith.constant 0 : i32
    return %c0_i32, %c0_i32_0 : i32, i32
  }
  func.func @transform_3(%arg0: i32) -> (i32, i32) {
    %c0_i32 = arith.constant 0 : i32
    %c0_i32_0 = arith.constant 0 : i32
    return %arg0, %c0_i32 : i32, i32
  }
}

module attributes {stable_mosaic.version = 11 : i64} {
  func.func @_proj_split_kernel(%arg0: i32, %arg1: memref<16x32xf32, #tpu.memory_space<vmem>>, %arg2: memref<32x64xf32, #tpu.memory_space<vmem>>, %arg3: memref<1x64xf32, #tpu.memory_space<vmem>>, %arg4: memref<16x32xf32, #tpu.memory_space<vmem>>, %arg5: memref<16x32xf32, #tpu.memory_space<vmem>>) attributes {dimension_semantics = [#tpu.dimension_semantics<parallel>], iteration_bounds = array<i64: 1>, scalar_prefetch = 0 : i64, scratch_operands = 0 : i64, tpu.core_type = #tpu.core_type<tc>, window_params = [{transform_indices = @transform_0, window_bounds = array<i64: 16, 32>}, {pipeline_mode = #tpu.pipeline_mode<synchronous>, transform_indices = @transform_1, window_bounds = array<i64: 32, 64>}, {pipeline_mode = #tpu.pipeline_mode<synchronous>, transform_indices = @transform_2, window_bounds = array<i64: 1, 64>}, {transform_indices = @transform_3, window_bounds = array<i64: 16, 32>}, {transform_indices = @transform_4, window_bounds = array<i64: 16, 32>}]} {
    %c0 = arith.constant 0 : index
    %c0_0 = arith.constant 0 : index
    %0 = vector.load %arg1[%c0, %c0_0] : memref<16x32xf32, #tpu.memory_space<vmem>>, vector<16x32xf32>
    %c0_1 = arith.constant 0 : index
    %c0_2 = arith.constant 0 : index
    %1 = vector.load %arg2[%c0_1, %c0_2] : memref<32x64xf32, #tpu.memory_space<vmem>>, vector<32x64xf32>
    %cst = arith.constant dense<0.000000e+00> : vector<16x64xf32>
    %2 = tpu.matmul %0, %1, %cst {dimension_numbers = #tpu.dot_dimension_numbers<[1], [0], [0], [1], [0, 0, 1, 1], [], []>} : vector<16x32xf32>, vector<32x64xf32>, vector<16x64xf32> -> vector<16x64xf32>
    %c0_3 = arith.constant 0 : index
    %c0_4 = arith.constant 0 : index
    %3 = vector.load %arg3[%c0_3, %c0_4] : memref<1x64xf32, #tpu.memory_space<vmem>>, vector<1x64xf32>
    %4 = vector.broadcast %3 : vector<1x64xf32> to vector<16x64xf32>
    %5 = arith.addf %2, %4 : vector<16x64xf32>
    %6 = vector.extract_strided_slice %5 {offsets = [0, 0], sizes = [16, 32], strides = [1, 1]} : vector<16x64xf32> to vector<16x32xf32>
    %c0_5 = arith.constant 0 : index
    %c0_6 = arith.constant 0 : index
    %7 = vector.load %arg4[%c0_5, %c0_6] : memref<16x32xf32, #tpu.memory_space<vmem>>, vector<16x32xf32>
    tpu.vector_store %arg4[%c0_5, %c0_6], %6 {strides = array<i32>} : memref<16x32xf32, #tpu.memory_space<vmem>>, vector<16x32xf32>,
    %8 = vector.extract_strided_slice %5 {offsets = [0, 32], sizes = [16, 32], strides = [1, 1]} : vector<16x64xf32> to vector<16x32xf32>
    %c0_7 = arith.constant 0 : index
    %c0_8 = arith.constant 0 : index
    %9 = vector.load %arg5[%c0_7, %c0_8] : memref<16x32xf32, #tpu.memory_space<vmem>>, vector<16x32xf32>
    tpu.vector_store %arg5[%c0_7, %c0_8], %8 {strides = array<i32>} : memref<16x32xf32, #tpu.memory_space<vmem>>, vector<16x32xf32>,
    return
  }
  func.func @transform_0(%arg0: i32) -> (i32, i32) {
    %c0_i32 = arith.constant 0 : i32
    %c0_i32_0 = arith.constant 0 : i32
    return %arg0, %c0_i32 : i32, i32
  }
  func.func @transform_1(%arg0: i32) -> (i32, i32) {
    %c0_i32 = arith.constant 0 : i32
    %c0_i32_0 = arith.constant 0 : i32
    %c0_i32_1 = arith.constant 0 : i32
    return %c0_i32, %c0_i32_0 : i32, i32
  }
  func.func @transform_2(%arg0: i32) -> (i32, i32) {
    %c0_i32 = arith.constant 0 : i32
    %c0_i32_0 = arith.constant 0 : i32
    %c0_i32_1 = arith.constant 0 : i32
    return %c0_i32, %c0_i32_0 : i32, i32
  }
  func.func @transform_3(%arg0: i32) -> (i32, i32) {
    %c0_i32 = arith.constant 0 : i32
    %c0_i32_0 = arith.constant 0 : i32
    return %arg0, %c0_i32 : i32, i32
  }
  func.func @transform_4(%arg0: i32) -> (i32, i32) {
    %c0_i32 = arith.constant 0 : i32
    %c0_i32_0 = arith.constant 0 : i32
    return %arg0, %c0_i32 : i32, i32
  }
}

module attributes {stable_mosaic.version = 11 : i64} {
  func.func @_ffn_ln_kernel(%arg0: i32, %arg1: memref<16x32xf32, #tpu.memory_space<vmem>>, %arg2: memref<32x64xf32, #tpu.memory_space<vmem>>, %arg3: memref<1x64xf32, #tpu.memory_space<vmem>>, %arg4: memref<64x32xf32, #tpu.memory_space<vmem>>, %arg5: memref<1x32xf32, #tpu.memory_space<vmem>>, %arg6: memref<1x32xf32, #tpu.memory_space<vmem>>, %arg7: memref<1x32xf32, #tpu.memory_space<vmem>>, %arg8: memref<16x32xf32, #tpu.memory_space<vmem>>) attributes {dimension_semantics = [#tpu.dimension_semantics<parallel>], iteration_bounds = array<i64: 1>, scalar_prefetch = 0 : i64, scratch_operands = 0 : i64, tpu.core_type = #tpu.core_type<tc>, window_params = [{transform_indices = @transform_0, window_bounds = array<i64: 16, 32>}, {pipeline_mode = #tpu.pipeline_mode<synchronous>, transform_indices = @transform_1, window_bounds = array<i64: 32, 64>}, {pipeline_mode = #tpu.pipeline_mode<synchronous>, transform_indices = @transform_2, window_bounds = array<i64: 1, 64>}, {pipeline_mode = #tpu.pipeline_mode<synchronous>, transform_indices = @transform_3, window_bounds = array<i64: 64, 32>}, {pipeline_mode = #tpu.pipeline_mode<synchronous>, transform_indices = @transform_4, window_bounds = array<i64: 1, 32>}, {pipeline_mode = #tpu.pipeline_mode<synchronous>, transform_indices = @transform_5, window_bounds = array<i64: 1, 32>}, {pipeline_mode = #tpu.pipeline_mode<synchronous>, transform_indices = @transform_6, window_bounds = array<i64: 1, 32>}, {transform_indices = @transform_7, window_bounds = array<i64: 16, 32>}]} {
    %c0 = arith.constant 0 : index
    %c0_0 = arith.constant 0 : index
    %0 = vector.load %arg1[%c0, %c0_0] : memref<16x32xf32, #tpu.memory_space<vmem>>, vector<16x32xf32>
    %c0_1 = arith.constant 0 : index
    %c0_2 = arith.constant 0 : index
    %1 = vector.load %arg2[%c0_1, %c0_2] : memref<32x64xf32, #tpu.memory_space<vmem>>, vector<32x64xf32>
    %cst = arith.constant dense<0.000000e+00> : vector<16x64xf32>
    %2 = tpu.matmul %0, %1, %cst {dimension_numbers = #tpu.dot_dimension_numbers<[1], [0], [0], [1], [0, 0, 1, 1], [], []>} : vector<16x32xf32>, vector<32x64xf32>, vector<16x64xf32> -> vector<16x64xf32>
    %c0_3 = arith.constant 0 : index
    %c0_4 = arith.constant 0 : index
    %3 = vector.load %arg3[%c0_3, %c0_4] : memref<1x64xf32, #tpu.memory_space<vmem>>, vector<1x64xf32>
    %4 = vector.broadcast %3 : vector<1x64xf32> to vector<16x64xf32>
    %5 = arith.addf %2, %4 : vector<16x64xf32>
    %cst_5 = arith.constant 0.000000e+00 : f32
    %6 = vector.broadcast %cst_5 : f32 to vector<16x64xf32>
    %7 = arith.maximumf %5, %6 : vector<16x64xf32>
    %c0_6 = arith.constant 0 : index
    %c0_7 = arith.constant 0 : index
    %8 = vector.load %arg4[%c0_6, %c0_7] : memref<64x32xf32, #tpu.memory_space<vmem>>, vector<64x32xf32>
    %cst_8 = arith.constant dense<0.000000e+00> : vector<16x32xf32>
    %9 = tpu.matmul %7, %8, %cst_8 {dimension_numbers = #tpu.dot_dimension_numbers<[1], [0], [0], [1], [0, 0, 1, 1], [], []>} : vector<16x64xf32>, vector<64x32xf32>, vector<16x32xf32> -> vector<16x32xf32>
    %10 = arith.addf %0, %9 : vector<16x32xf32>
    %c0_9 = arith.constant 0 : index
    %c0_10 = arith.constant 0 : index
    %11 = vector.load %arg5[%c0_9, %c0_10] : memref<1x32xf32, #tpu.memory_space<vmem>>, vector<1x32xf32>
    %12 = vector.broadcast %11 : vector<1x32xf32> to vector<16x32xf32>
    %13 = arith.addf %10, %12 : vector<16x32xf32>
    %c0_11 = arith.constant 0 : index
    %c0_12 = arith.constant 0 : index
    %14 = vector.load %arg6[%c0_11, %c0_12] : memref<1x32xf32, #tpu.memory_space<vmem>>, vector<1x32xf32>
    %c0_13 = arith.constant 0 : index
    %c0_14 = arith.constant 0 : index
    %15 = vector.load %arg7[%c0_13, %c0_14] : memref<1x32xf32, #tpu.memory_space<vmem>>, vector<1x32xf32>
    %cst_15 = arith.constant dense<0.000000e+00> : vector<16xf32>
    %16 = vector.multi_reduction <add>, %13, %cst_15 [1] : vector<16x32xf32> to vector<16xf32>
    %17 = vector.shape_cast %16 : vector<16xf32> to vector<16x1xf32>
    %cst_16 = arith.constant 3.200000e+01 : f32
    %18 = vector.broadcast %cst_16 : f32 to vector<16x1xf32>
    %19 = arith.divf %17, %18 : vector<16x1xf32>
    %20 = vector.broadcast %19 : vector<16x1xf32> to vector<16x32xf32>
    %21 = arith.subf %13, %20 : vector<16x32xf32>
    %22 = arith.mulf %21, %21 : vector<16x32xf32>
    %cst_17 = arith.constant dense<0.000000e+00> : vector<16xf32>
    %23 = vector.multi_reduction <add>, %22, %cst_17 [1] : vector<16x32xf32> to vector<16xf32>
    %24 = vector.shape_cast %23 : vector<16xf32> to vector<16x1xf32>
    %cst_18 = arith.constant 3.200000e+01 : f32
    %25 = vector.broadcast %cst_18 : f32 to vector<16x1xf32>
    %26 = arith.divf %24, %25 : vector<16x1xf32>
    %27 = vector.broadcast %19 : vector<16x1xf32> to vector<16x32xf32>
    %28 = arith.subf %13, %27 : vector<16x32xf32>
    %cst_19 = arith.constant 9.99999974E-6 : f32
    %29 = vector.broadcast %cst_19 : f32 to vector<16x1xf32>
    %30 = arith.addf %26, %29 : vector<16x1xf32>
    %31 = math.rsqrt %30 : vector<16x1xf32>
    %32 = vector.broadcast %31 : vector<16x1xf32> to vector<16x32xf32>
    %33 = arith.mulf %28, %32 : vector<16x32xf32>
    %34 = vector.broadcast %14 : vector<1x32xf32> to vector<16x32xf32>
    %35 = arith.mulf %33, %34 : vector<16x32xf32>
    %36 = vector.broadcast %15 : vector<1x32xf32> to vector<16x32xf32>
    %37 = arith.addf %35, %36 : vector<16x32xf32>
    %c0_20 = arith.constant 0 : index
    %c0_21 = arith.constant 0 : index
    %38 = vector.load %arg8[%c0_20, %c0_21] : memref<16x32xf32, #tpu.memory_space<vmem>>, vector<16x32xf32>
    tpu.vector_store %arg8[%c0_20, %c0_21], %37 {strides = array<i32>} : memref<16x32xf32, #tpu.memory_space<vmem>>, vector<16x32xf32>,
    return
  }
  func.func @transform_0(%arg0: i32) -> (i32, i32) {
    %c0_i32 = arith.constant 0 : i32
    %c0_i32_0 = arith.constant 0 : i32
    return %arg0, %c0_i32 : i32, i32
  }
  func.func @transform_1(%arg0: i32) -> (i32, i32) {
    %c0_i32 = arith.constant 0 : i32
    %c0_i32_0 = arith.constant 0 : i32
    %c0_i32_1 = arith.constant 0 : i32
    return %c0_i32, %c0_i32_0 : i32, i32
  }
  func.func @transform_2(%arg0: i32) -> (i32, i32) {
    %c0_i32 = arith.constant 0 : i32
    %c0_i32_0 = arith.constant 0 : i32
    %c0_i32_1 = arith.constant 0 : i32
    return %c0_i32, %c0_i32_0 : i32, i32
  }
  func.func @transform_3(%arg0: i32) -> (i32, i32) {
    %c0_i32 = arith.constant 0 : i32
    %c0_i32_0 = arith.constant 0 : i32
    %c0_i32_1 = arith.constant 0 : i32
    return %c0_i32, %c0_i32_0 : i32, i32
  }
  func.func @transform_4(%arg0: i32) -> (i32, i32) {
    %c0_i32 = arith.constant 0 : i32
    %c0_i32_0 = arith.constant 0 : i32
    %c0_i32_1 = arith.constant 0 : i32
    return %c0_i32, %c0_i32_0 : i32, i32
  }
  func.func @transform_5(%arg0: i32) -> (i32, i32) {
    %c0_i32 = arith.constant 0 : i32
    %c0_i32_0 = arith.constant 0 : i32
    %c0_i32_1 = arith.constant 0 : i32
    return %c0_i32, %c0_i32_0 : i32, i32
  }
  func.func @transform_6(%arg0: i32) -> (i32, i32) {
    %c0_i32 = arith.constant 0 : i32
    %c0_i32_0 = arith.constant 0 : i32
    %c0_i32_1 = arith.constant 0 : i32
    return %c0_i32, %c0_i32_0 : i32, i32
  }
  func.func @transform_7(%arg0: i32) -> (i32, i32) {
    %c0_i32 = arith.constant 0 : i32
    %c0_i32_0 = arith.constant 0 : i32
    return %arg0, %c0_i32 : i32, i32
  }
}

module attributes {stable_mosaic.version = 11 : i64} {
  func.func @_layernorm_kernel(%arg0: i32, %arg1: memref<16x32xf32, #tpu.memory_space<vmem>>, %arg2: memref<1x32xf32, #tpu.memory_space<vmem>>, %arg3: memref<1x32xf32, #tpu.memory_space<vmem>>, %arg4: memref<16x32xf32, #tpu.memory_space<vmem>>) attributes {dimension_semantics = [#tpu.dimension_semantics<parallel>], iteration_bounds = array<i64: 1>, scalar_prefetch = 0 : i64, scratch_operands = 0 : i64, tpu.core_type = #tpu.core_type<tc>, window_params = [{transform_indices = @transform_0, window_bounds = array<i64: 16, 32>}, {pipeline_mode = #tpu.pipeline_mode<synchronous>, transform_indices = @transform_1, window_bounds = array<i64: 1, 32>}, {pipeline_mode = #tpu.pipeline_mode<synchronous>, transform_indices = @transform_2, window_bounds = array<i64: 1, 32>}, {transform_indices = @transform_3, window_bounds = array<i64: 16, 32>}]} {
    %c0 = arith.constant 0 : index
    %c0_0 = arith.constant 0 : index
    %0 = vector.load %arg1[%c0, %c0_0] : memref<16x32xf32, #tpu.memory_space<vmem>>, vector<16x32xf32>
    %c0_1 = arith.constant 0 : index
    %c0_2 = arith.constant 0 : index
    %1 = vector.load %arg2[%c0_1, %c0_2] : memref<1x32xf32, #tpu.memory_space<vmem>>, vector<1x32xf32>
    %c0_3 = arith.constant 0 : index
    %c0_4 = arith.constant 0 : index
    %2 = vector.load %arg3[%c0_3, %c0_4] : memref<1x32xf32, #tpu.memory_space<vmem>>, vector<1x32xf32>
    %cst = arith.constant dense<0.000000e+00> : vector<16xf32>
    %3 = vector.multi_reduction <add>, %0, %cst [1] : vector<16x32xf32> to vector<16xf32>
    %4 = vector.shape_cast %3 : vector<16xf32> to vector<16x1xf32>
    %cst_5 = arith.constant 3.200000e+01 : f32
    %5 = vector.broadcast %cst_5 : f32 to vector<16x1xf32>
    %6 = arith.divf %4, %5 : vector<16x1xf32>
    %7 = vector.broadcast %6 : vector<16x1xf32> to vector<16x32xf32>
    %8 = arith.subf %0, %7 : vector<16x32xf32>
    %9 = arith.mulf %8, %8 : vector<16x32xf32>
    %cst_6 = arith.constant dense<0.000000e+00> : vector<16xf32>
    %10 = vector.multi_reduction <add>, %9, %cst_6 [1] : vector<16x32xf32> to vector<16xf32>
    %11 = vector.shape_cast %10 : vector<16xf32> to vector<16x1xf32>
    %cst_7 = arith.constant 3.200000e+01 : f32
    %12 = vector.broadcast %cst_7 : f32 to vector<16x1xf32>
    %13 = arith.divf %11, %12 : vector<16x1xf32>
    %14 = vector.broadcast %6 : vector<16x1xf32> to vector<16x32xf32>
    %15 = arith.subf %0, %14 : vector<16x32xf32>
    %cst_8 = arith.constant 9.99999974E-6 : f32
    %16 = vector.broadcast %cst_8 : f32 to vector<16x1xf32>
    %17 = arith.addf %13, %16 : vector<16x1xf32>
    %18 = math.rsqrt %17 : vector<16x1xf32>
    %19 = vector.broadcast %18 : vector<16x1xf32> to vector<16x32xf32>
    %20 = arith.mulf %15, %19 : vector<16x32xf32>
    %21 = vector.broadcast %1 : vector<1x32xf32> to vector<16x32xf32>
    %22 = arith.mulf %20, %21 : vector<16x32xf32>
    %23 = vector.broadcast %2 : vector<1x32xf32> to vector<16x32xf32>
    %24 = arith.addf %22, %23 : vector<16x32xf32>
    %c0_9 = arith.constant 0 : index
    %c0_10 = arith.constant 0 : index
    %25 = vector.load %arg4[%c0_9, %c0_10] : memref<16x32xf32, #tpu.memory_space<vmem>>, vector<16x32xf32>
    tpu.vector_store %arg4[%c0_9, %c0_10], %24 {strides = array<i32>} : memref<16x32xf32, #tpu.memory_space<vmem>>, vector<16x32xf32>,
    return
  }
  func.func @transform_0(%arg0: i32) -> (i32, i32) {
    %c0_i32 = arith.constant 0 : i32
    %c0_i32_0 = arith.constant 0 : i32
    return %arg0, %c0_i32 : i32, i32
  }
  func.func @transform_1(%arg0: i32) -> (i32, i32) {
    %c0_i32 = arith.constant 0 : i32
    %c0_i32_0 = arith.constant 0 : i32
    %c0_i32_1 = arith.constant 0 : i32
    return %c0_i32, %c0_i32_0 : i32, i32
  }
  func.func @transform_2(%arg0: i32) -> (i32, i32) {
    %c0_i32 = arith.constant 0 : i32
    %c0_i32_0 = arith.constant 0 : i32
    %c0_i32_1 = arith.constant 0 : i32
    return %c0_i32, %c0_i32_0 : i32, i32
  }
  func.func @transform_3(%arg0: i32) -> (i32, i32) {
    %c0_i32 = arith.constant 0 : i32
    %c0_i32_0 = arith.constant 0 : i32
    return %arg0, %c0_i32 : i32, i32
  }
}

</mosaic_0001>

<bundles_post_ra>
// kernel: decoder_forward.16
= control target key start
LH: loop header
LB: loop body
LE: loop exit
PB: predicated region body
PF: predicated region fallthrough
CT: control target
= control target key end

     0   :  { %vm29_vm0 = vcmask 261120   ;;  %s225_s1 = inlined_call_operand.vmem [shape: f32[32,64], index: 1, kind: input, shape index: {}]   ;;  %s226_s0 = inlined_call_operand.vmem [shape: f32[16,32], index: 0, kind: input, shape index: {}]   ;;  %s227_s2 = inlined_call_operand.vmem [shape: f32[1,64], index: 2, kind: input, shape index: {}]   ;;  %s228_s3 = inlined_call_operand.vmem [shape: f32[16,32], index: 3, kind: output, shape index: {0}]   ;;  %s229_s4 = inlined_call_operand.vmem [shape: f32[16,32], index: 4, kind: output, shape index: {1}]  }
   0x1   :  { %v18_v0 = vld [vmem:[%s225_s1] sm:$0xff]  ;;  %v19_v1 = vld [vmem:[%s225_s1 + $0x8] sm:$0xff]  ;;  %v20_v2 = vld [vmem:[%s225_s1 + $0x10] sm:$0xff] }
   0x2   :  { %v151_v3 = vpack.c.bf16 %v19_v1, %v18_v0  ;;  %v21_v4 = vld [vmem:[%s225_s1 + $0x18] sm:$0xff]  ;;  %v16_v5 = vld [vmem:[%s226_s0] sm:$0xff]  ;;  %v17_v7 = vld [vmem:[%s226_s0 + $0x8] sm:$0xff]  ;;  %s160_s0 = smov 96  }
   0x3   :  { %v155_v6 = vpack.c.bf16 %v21_v4, %v20_v2  ;;  %148 = vmatprep.mubr.msk.f32.mxu0 %vm29_vm0, %v16_v5  ;;  %v131_v8 = vld [vmem:[%s227_s2] ss:$0 sm:$0xff] }
   0x4   :  { %152 = vmatprep.subr.bf16.mxu0 %v151_v3 }
   0x5   :  { %154 = vmatpush3.bf16.msra.mxu0 %v151_v3 }
   0x6   :  { %156 = vmatprep.subr.bf16.mxu0 %v155_v6 }
   0x9   :  { %158 = vmatpush3.bf16.msra.mxu0 %v155_v6 }
   0xc   :  { %149 = vmatmul.mubr.msk.f32.vlgmr.msra.gmra.mrb[0].mxu0 %vm29_vm0, %v17_v7 }
  0xdf   :  { %v150_v9 = vpop.f32.mrb[0].mxu0 }
  0xe0   :  { %v108_v10 = vadd.f32 %v150_v9, %v131_v8  ;;  %v102_v11 = vpop.f32.mrb[1].mxu0 }
  0xe1   :  { %v103_v12 = vadd.f32 %v131_v8, %v102_v11 }
  0xe2   :  { %112 = vst.msk [vmem:[%s228_s3 + $0x8] sm:$0xff] %vm29_vm0, %v108_v10 }
  0xe3   :  { %111 = vst.msk [vmem:[%s228_s3] sm:$0xff] %vm29_vm0, %v103_v12  ;;  %115 = vrot.lane.b32.xlu0 %v103_v12, %s160_s0 }
  0xe7   :  { %117 = vrot.lane.b32.xlu0 %v108_v10, %s160_s0 }
 0x155   :  { %v116_v13 = vpop.permute.xlu0 %115 }
 0x156   :  { %121 = vst.msk [vmem:[%s229_s4] sm:$0xff] %vm29_vm0, %v116_v13 }
 0x159   :  { %v118_v14 = vpop.permute.xlu0 %117 }
 0x15a   :  { %122 = vst.msk [vmem:[%s229_s4 + $0x8] sm:$0xff] %vm29_vm0, %v118_v14 }

// kernel: decoder_forward.15
= control target key start
LH: loop header
LB: loop body
LE: loop exit
PB: predicated region body
PF: predicated region fallthrough
CT: control target
= control target key end

     0   :  { %vm27_vm0 = vcmask 261120   ;;  %s194_s1 = inlined_call_operand.vmem [shape: f32[32,32], index: 1, kind: input, shape index: {}]   ;;  %s195_s0 = inlined_call_operand.vmem [shape: f32[16,32], index: 0, kind: input, shape index: {}]   ;;  %s196_s2 = inlined_call_operand.vmem [shape: f32[1,32], index: 2, kind: input, shape index: {}]   ;;  %s197_s3 = inlined_call_operand.vmem [shape: f32[16,32], index: 3, kind: output, shape index: {}]  }
   0x1   :  { %v16_v0 = vld [vmem:[%s194_s1] sm:$0xff]  ;;  %v17_v1 = vld [vmem:[%s194_s1 + $0x8] sm:$0xff]  ;;  %v18_v2 = vld [vmem:[%s194_s1 + $0x10] sm:$0xff] }
   0x2   :  { %v135_v3 = vpack.c.bf16 %v17_v1, %v16_v0  ;;  %v19_v4 = vld [vmem:[%s194_s1 + $0x18] sm:$0xff]  ;;  %v14_v5 = vld [vmem:[%s195_s0] sm:$0xff]  ;;  %v15_v7 = vld [vmem:[%s195_s0 + $0x8] sm:$0xff] }
   0x3   :  { %v139_v6 = vpack.c.bf16 %v19_v4, %v18_v2  ;;  %132 = vmatprep.mubr.msk.f32.mxu0 %vm27_vm0, %v14_v5  ;;  %v115_v8 = vld [vmem:[%s196_s2] ss:$0 sm:$0xff] }
   0x4   :  { %136 = vmatprep.subr.bf16.mxu0 %v135_v3 }
   0x5   :  { %138 = vmatpush3.bf16.msra.mxu0 %v135_v3 }
   0x6   :  { %140 = vmatprep.subr.bf16.mxu0 %v139_v6 }
   0x9   :  { %142 = vmatpush3.bf16.msra.mxu0 %v139_v6 }
   0xc   :  { %133 = vmatmul.mubr.msk.f32.vlgmr.msra.gmra.mrb[0].mxu0 %vm27_vm0, %v15_v7 }
  0xdf   :  { %v134_v9 = vpop.f32.mrb[0].mxu0 }
  0xe0   :  { %v106_v10 = vadd.f32 %v134_v9, %v115_v8  ;;  %v100_v11 = vpop.f32.mrb[1].mxu0 }
  0xe1   :  { %v101_v12 = vadd.f32 %v115_v8, %v100_v11 }
  0xe2   :  { %110 = vst.msk [vmem:[%s197_s3 + $0x8] sm:$0xff] %vm27_vm0, %v106_v10 }
  0xe3   :  { %109 = vst.msk [vmem:[%s197_s3] sm:$0xff] %vm27_vm0, %v101_v12 }

// kernel: decoder_forward.13
= control target key start
LH: loop header
LB: loop body
LE: loop exit
PB: predicated region body
PF: predicated region fallthrough
CT: control target
= control target key end

     0   :  { %vm30_vm0 = vcmask 261120   ;;  %s175_s10 = smov 96   ;;  %s253_s1 = inlined_call_operand.vmem [shape: f32[32,96], index: 1, kind: input, shape index: {}]   ;;  %s254_s0 = inlined_call_operand.vmem [shape: f32[16,32], index: 0, kind: input, shape index: {}]   ;;  %s255_s2 = inlined_call_operand.vmem [shape: f32[1,96], index: 2, kind: input, shape index: {}]   ;;  %s256_s3 = inlined_call_operand.vmem [shape: f32[16,32], index: 3, kind: output, shape index: {0}]   ;;  %s257_s5 = inlined_call_operand.vmem [shape: f32[16,32], index: 5, kind: output, shape index: {2}]   ;;  %s258_s4 = inlined_call_operand.vmem [shape: f32[16,32], index: 4, kind: output, shape index: {1}]  }
   0x1   :  { %v19_v0 = vld [vmem:[%s253_s1] sm:$0xff]  ;;  %v20_v1 = vld [vmem:[%s253_s1 + $0x8] sm:$0xff]  ;;  %v21_v2 = vld [vmem:[%s253_s1 + $0x10] sm:$0xff] }
   0x2   :  { %v164_v3 = vpack.c.bf16 %v20_v1, %v19_v0  ;;  %v22_v4 = vld [vmem:[%s253_s1 + $0x18] sm:$0xff]  ;;  %v17_v5 = vld [vmem:[%s254_s0] sm:$0xff]  ;;  %v18_v7 = vld [vmem:[%s254_s0 + $0x8] sm:$0xff]  ;;  %s174_s0 = smov 64  }
   0x3   :  { %v168_v6 = vpack.c.bf16 %v22_v4, %v21_v2  ;;  %161 = vmatprep.mubr.msk.f32.mxu0 %vm30_vm0, %v17_v5  ;;  %v144_v8 = vld [vmem:[%s255_s2] ss:$0 sm:$0xff] }
   0x4   :  { %165 = vmatprep.subr.bf16.mxu0 %v164_v3 }
   0x5   :  { %167 = vmatpush3.bf16.msra.mxu0 %v164_v3 }
   0x6   :  { %169 = vmatprep.subr.bf16.mxu0 %v168_v6 }
   0x9   :  { %171 = vmatpush3.bf16.msra.mxu0 %v168_v6 }
   0xc   :  { %162 = vmatmul.mubr.msk.f32.vlgmr.msra.gmra.mrb[0].mxu0 %vm30_vm0, %v18_v7 }
  0xdf   :  { %v163_v9 = vpop.f32.mrb[0].mxu0 }
  0xe0   :  { %v109_v10 = vadd.f32 %v163_v9, %v144_v8  ;;  %v103_v11 = vpop.f32.mrb[1].mxu0 }
  0xe1   :  { %v104_v12 = vadd.f32 %v144_v8, %v103_v11 }
  0xe2   :  { %113 = vst.msk [vmem:[%s256_s3 + $0x8] sm:$0xff] %vm30_vm0, %v109_v10 }
  0xe3   :  { %112 = vst.msk [vmem:[%s256_s3] sm:$0xff] %vm30_vm0, %v104_v12  ;;  %124 = vrot.lane.b32.xlu1 %v104_v12, %s174_s0  ;;  %116 = vrot.lane.b32.xlu0 %v104_v12, %s175_s10 }
  0xe7   :  { %126 = vrot.lane.b32.xlu1 %v109_v10, %s174_s0  ;;  %118 = vrot.lane.b32.xlu0 %v109_v10, %s175_s10 }
 0x155   :  { %v125_v13 = vpop.permute.xlu1 %124  ;;  %v117_v14 = vpop.permute.xlu0 %116 }
 0x156   :  { %130 = vst.msk [vmem:[%s257_s5] sm:$0xff] %vm30_vm0, %v125_v13  ;;  %122 = vst.msk [vmem:[%s258_s4] sm:$0xff] %vm30_vm0, %v117_v14 }
 0x159   :  { %v127_v15 = vpop.permute.xlu1 %126  ;;  %v119_v16 = vpop.permute.xlu0 %118 }
 0x15a   :  { %131 = vst.msk [vmem:[%s257_s5 + $0x8] sm:$0xff] %vm30_vm0, %v127_v15  ;;  %123 = vst.msk [vmem:[%s258_s4 + $0x8] sm:$0xff] %vm30_vm0, %v119_v16 }

// kernel: decoder_forward.14
= control target key start
LH: loop header
LB: loop body
LE: loop exit
PB: predicated region body
PF: predicated region fallthrough
CT: control target
= control target key end

     0   :  { %s1653_s27 = smov 0   ;;  %s1791_s0 = inlined_call_operand.vmem [shape: f32[2,8,32], index: 0, kind: input, shape index: {}]   ;;  %s1792_s1 = inlined_call_operand.vmem [shape: f32[2,8,32], index: 1, kind: input, shape index: {}]   ;;  %s1793_s2 = inlined_call_operand.vmem [shape: f32[2,8,32], index: 2, kind: input, shape index: {}]   ;;  %s1794_s3 = inlined_call_operand.vmem [shape: f32[32,32], index: 3, kind: input, shape index: {}]   ;;  %s1795_s4 = inlined_call_operand.vmem [shape: f32[1,32], index: 4, kind: input, shape index: {}]   ;;  %s1796_s5 = inlined_call_operand.vmem [shape: f32[2,8,32], index: 5, kind: input, shape index: {}]   ;;  %s1797_s6 = inlined_call_operand.vmem [shape: f32[1,32], index: 6, kind: input, shape index: {}]   ;;  %s1798_s7 = inlined_call_operand.vmem [shape: f32[1,32], index: 7, kind: input, shape index: {}]   ;;  %s1799_s8 = inlined_call_operand.vmem [shape: f32[2,8,32], index: 8, kind: output, shape index: {}]  }
   0x1 LB: > { %s1442_s28 = sadd.s32 4294967295, %s1601_s27   ;;  %p1446_p0 = scmp.ge.s32.totalorder %s1601_s27, 1  ;;  %s1601_s27 = sphi %s1653_s27, %s18_s27  }
   0x2   : > { %p288_p1 = scmp.lt.s32.totalorder %s1601_s27, 3 }
   0x4   : > { %p289_p2 = pnand %p1446_p0, %p288_p1 }
   0x5   : > { %p332_p3 = scmp.lt.s32.totalorder (!%p289_p2), %s1442_s28, 1  ;;  %v1603_v0 = vmov (!%p289_p2), 0.0   ;;  %vm1604_vm0 = vmmov (!%p289_p2), 0   ;;  %vm368_vm1 = vcmask (!%p289_p2), 64512   ;;  %s1605_s14 = smov (!%p289_p2), 120   ;;  %v355_v19 = vld [vmem:[%s1794_s3] sm:$0xff] (!%p289_p2) }
   0x6   : > { %292 = sbr.rel (%p289_p2) target bundleno = 2350 (0x92e), region = 52  ;;  %1497 = vmatprep.subr.mxu0 (!%p289_p2), %v1603_v0  ;;  %1499 = vmatprep.mubr.msk.f32.mxu0 (!%p289_p2), %vm1604_vm0, %v1603_v0  ;;  %s1606_s15 = smov (!%p289_p2), 112   ;;  %v356_v48 = vld [vmem:[%s1794_s3 + $0x8] sm:$0xff] (!%p289_p2)  ;;  %v357_v54 = vld [vmem:[%s1794_s3 + $0x10] sm:$0xff] (!%p289_p2)  ;;  %vm1323_vm2 = vcmask (!%p289_p2), 261120  }
   0x7   : > { %1507 = vmatprep.subr.mxu1 (!%p289_p2), %v1603_v0  ;;  %1509 = vmatprep.mubr.msk.f32.mxu1 (!%p289_p2), %vm1604_vm0, %v1603_v0  ;;  %s1607_s21 = smov (!%p289_p2), 104  }
   0x8   : > { %1508 = vmatpush3.msra.mxu1 (!%p289_p2), %v355_v19 }
   0x9   : > { %1517 = vmatprep.subr.mxu1 (!%p289_p2), %v1603_v0 }
   0xd   : > { %s1801_s28 = smov (!%p332_p3, %s1442_s28), 1 }
   0xe   : > { %s1667_s29 = sshll.u32 %s1801_s28, 3 }
   0xf   : > { %s339_s10 = scalar_lea.vmem %s1792_s1, %s1667_s29  ;;  %s335_s13 = scalar_lea.vmem %s1791_s0, %s1667_s29 }
  0x10   : > { %v1673_v1 = vld [vmem:[%s339_s10] sm:$0xff]  ;;  %s343_s18 = scalar_lea.vmem %s1793_s2, %s1667_s29  ;;  %s347_s10 = scalar_lea.vmem %s1796_s5, %s1667_s29 }
  0x11   : > { %1498 = vmatpush3.xpose.msk.msra.mxu0 %vm368_vm1, %v1673_v1  ;;  %v352_v2 = vld [vmem:[%s335_s13] sm:$0xff]  ;;  %605 = vrot.lane.b32.xlu1 %v1673_v1, %s1605_s14  ;;  %s351_s19 = scalar_lea.vmem %s1799_s8, %s1667_s29 }
  0x12   : > { %1502 = vmatprep.subr.mxu0 %v1603_v0  ;;  %v1695_v11 = vld [vmem:[%s343_s18] sm:$0xff] }
  0x14   : > { %1500 = vmatmul.mubr.msk.f32.vlgmr.msra.gmra.mrb[0].mxu0 %vm368_vm1, %v352_v2 }
  0x15   : > { %1504 = vmatprep.mubr.msk.f32.mxu0 %vm1604_vm0, %v1603_v0  ;;  %603 = vrot.lane.b32.xlu1 %v352_v2, %s1605_s14 }
  0x16   : > { %1503 = vmatpush3.msra.mxu0 %v1695_v11 }
  0x17   : > { %1512 = vmatprep.subr.mxu0 %v1603_v0 }
  0x19   : > { %843 = vrot.lane.b32.xlu1 %v352_v2, %s1606_s15 }
  0x83   : > { %v606_v13 = vpop.permute.xlu1 %605 }
  0x87   : > { %v604_v16 = vpop.permute.xlu1 %603 }
  0x8b   : > { %v844_v18 = vpop.permute.xlu1 %843 }
  0xe7   : > { %v441_v3 = vpop.f32.mrb[0].mxu0 }
  0xe8   : > { %v1501_v4 = vpop.f32.mrb[1].mxu0  ;;  %v445_v5 = vsel %vm368_vm1, %v441_v3, -inf }
  0xe9   : > { %446 = vmax.xlane.f32.xlu0 %v445_v5 }
 0x176   : > { %v447_v6 = vpop.xlane.xlu0 %446 }
 0x177   : > { %v448_v7 = vsub.f32 %v441_v3, %v447_v6  ;;  %v358_v3 = vld [vmem:[%s1794_s3 + $0x18] sm:$0xff]  ;;  %v359_v6 = vld [vmem:[%s347_s10] sm:$0xff] }
 0x179   : > { %v449_v8 = vmul.f32 1.442695, %v448_v7  ;;  %v1452_v7 = vld [vmem:[%s1795_s4] ss:$0 sm:$0xff] }
 0x17b   : > { %1577 = vpow2.f32 %v449_v8  ;;  %v367_v8 = vadd.f32 %v1452_v7, %v359_v6 }
 0x185   : > { %v1578_v9 = vpop.eup %1577 }
 0x186   : > { %v451_v10 = vsel %vm368_vm1, %v1578_v9, 0.0 }
 0x187   : > { %452 = vadd.xlane.f32.xlu0 %v451_v10 }
 0x19d   : > { %845 = vrot.lane.b32.xlu0 %v1673_v1, %s1606_s15 }
 0x214   : > { %v453_v12 = vpop.xlane.xlu0 %452 }
 0x215   : > { %1579 = vrcp.f32 %v453_v12 }
 0x218   : > { %v846_v17 = vpop.permute.xlu0 %845 }
 0x21f   : > { %v1580_v14 = vpop.eup %1579 }
 0x220   : > { %v455_v15 = vmul.f32 %v1580_v14, %v1578_v9 }
 0x222   : > { %1505 = vmatmul.mubr.msk.f32.vlgmr.msra.gmra.mrb[2].mxu0 %vm368_vm1, %v455_v15 }
 0x223   : > { %1513 = vmatpush3.xpose.msk.msra.mxu0 %vm368_vm1, %v606_v13  ;;  %1514 = vmatprep.mubr.msk.f32.mxu0 %vm1604_vm0, %v1603_v0 }
 0x224   : > { %1527 = vmatprep.subr.mxu0 %v1603_v0 }
 0x226   : > { %1515 = vmatmul.mubr.msk.f32.vlgmr.msra.gmra.mrb[4].mxu0 %vm368_vm1, %v604_v16 }
 0x227   : > { %1528 = vmatpush3.xpose.msk.msra.mxu0 %vm368_vm1, %v846_v17  ;;  %1529 = vmatprep.mubr.msk.f32.mxu0 %vm1604_vm0, %v1603_v0 }
 0x228   : > { %1532 = vmatprep.subr.mxu0 %v1603_v0 }
 0x22a   : > { %1530 = vmatmul.mubr.msk.f32.vlgmr.msra.gmra.mrb[6].mxu0 %vm368_vm1, %v844_v18 }
 0x22b   : > { %1534 = vmatprep.mubr.msk.f32.mxu0 %vm1604_vm0, %v1603_v0 }
 0x2f5   : > { %v525_v20 = vpop.f32.mrb[2].mxu0 }
 0x2f6   : > { %v1506_v21 = vpop.f32.mrb[3].mxu0  ;;  %1510 = vmatmul.mubr.msk.f32.vlgmr.msra.gmra.mrb[0].mxu1 %vm368_vm1, %v525_v20 }
 0x2f7   : > { %1519 = vmatprep.mubr.msk.f32.mxu1 %vm1604_vm0, %v1603_v0  ;;  %v1469_v21 = vld [vmem:[%s1797_s6] ss:$0 sm:$0xff] }
 0x2f9   : > { %v677_v22 = vpop.f32.mrb[4].mxu0 }
 0x2fa   : > { %v1516_v23 = vpop.f32.mrb[5].mxu0  ;;  %v681_v27 = vsel %vm368_vm1, %v677_v22, -inf }
 0x2fb   : > { %v1470_v23 = vld [vmem:[%s1798_s7] ss:$0 sm:$0xff] }
 0x2fd   : > { %v917_v24 = vpop.f32.mrb[6].mxu0 }
 0x2fe   : > { %v1531_v25 = vpop.f32.mrb[7].mxu0  ;;  %v921_v26 = vsel %vm368_vm1, %v917_v24, -inf }
 0x2ff   : > { %922 = vmax.xlane.f32.xlu1 %v921_v26 }
 0x310   : > { %932 = vrot.lane.b32.xlu1 %v1695_v11, %s1606_s15 }
 0x314   : > { %1082 = vrot.lane.b32.xlu1 %v352_v2, %s1607_s21 }
 0x338   : > { %682 = vmax.xlane.f32.xlu1 %v681_v27 }
 0x349   : > { %693 = vrot.lane.b32.xlu1 %v1695_v11, %s1605_s14 }
 0x38c   : > { %v923_v28 = vpop.xlane.xlu1 %922 }
 0x38d   : > { %v924_v29 = vsub.f32 %v917_v24, %v923_v28 }
 0x38f   : > { %v925_v30 = vmul.f32 1.442695, %v924_v29 }
 0x390   : > { %v933_v31 = vpop.permute.xlu1 %932 }
 0x391   : > { %1581 = vpow2.f32 %v925_v30  ;;  %1533 = vmatpush3.msra.mxu0 %v933_v31 }
 0x392   : > { %1542 = vmatprep.subr.mxu0 %v1603_v0 }
 0x394   : > { %v1083_v34 = vpop.permute.xlu1 %1082 }
 0x39b   : > { %v1582_v32 = vpop.eup %1581 }
 0x39c   : > { %v927_v33 = vsel %vm368_vm1, %v1582_v32, 0.0 }
 0x39d   : > { %928 = vadd.xlane.f32.xlu0 %v927_v33 }
 0x3b3   : > { %1084 = vrot.lane.b32.xlu0 %v1673_v1, %s1607_s21 }
 0x3c5   : > { %v683_v35 = vpop.xlane.xlu1 %682 }
 0x3c6   : > { %v684_v36 = vsub.f32 %v677_v22, %v683_v35 }
 0x3c8   : > { %v685_v37 = vmul.f32 1.442695, %v684_v36 }
 0x3c9   : > { %v694_v40 = vpop.permute.xlu1 %693 }
 0x3ca   : > { %1583 = vpow2.f32 %v685_v37  ;;  %1518 = vmatpush3.msra.mxu1 %v694_v40 }
 0x3cb   : > { %1522 = vmatprep.subr.mxu1 %v1603_v0 }
 0x3d4   : > { %v1584_v38 = vpop.eup %1583 }
 0x3d5   : > { %v687_v39 = vsel %vm368_vm1, %v1584_v38, 0.0 }
 0x3d6   : > { %688 = vadd.xlane.f32.xlu0 %v687_v39 }
 0x42a   : > { %v929_v41 = vpop.xlane.xlu0 %928 }
 0x42b   : > { %1585 = vrcp.f32 %v929_v41 }
 0x42e   : > { %v1085_v44 = vpop.permute.xlu0 %1084 }
 0x435   : > { %v1586_v42 = vpop.eup %1585 }
 0x436   : > { %v931_v43 = vmul.f32 %v1586_v42, %v1582_v32 }
 0x438   : > { %1535 = vmatmul.mubr.msk.f32.vlgmr.msra.gmra.mrb[8].mxu0 %vm368_vm1, %v931_v43 }
 0x439   : > { %1543 = vmatpush3.xpose.msk.msra.mxu0 %vm368_vm1, %v1085_v44  ;;  %1544 = vmatprep.mubr.msk.f32.mxu0 %vm1604_vm0, %v1603_v0 }
 0x43c   : > { %1545 = vmatmul.mubr.msk.f32.vlgmr.msra.gmra.mrb[10].mxu0 %vm368_vm1, %v1083_v34 }
 0x463   : > { %v689_v45 = vpop.xlane.xlu0 %688 }
 0x464   : > { %1587 = vrcp.f32 %v689_v45 }
 0x46e   : > { %v1588_v46 = vpop.eup %1587 }
 0x46f   : > { %v691_v47 = vmul.f32 %v1588_v46, %v1584_v38 }
 0x471   : > { %1520 = vmatmul.mubr.msk.f32.vlgmr.msra.gmra.mrb[2].mxu1 %vm368_vm1, %v691_v47 }
 0x472   : > { %1524 = vmatprep.mubr.msk.f32.mxu1 %vm1604_vm0, %v1603_v0  ;;  %1523 = vmatpush3.msra.mxu1 %v356_v48 }
 0x473   : > { %1537 = vmatprep.subr.mxu1 %v1603_v0 }
 0x50b   : > { %v1004_v49 = vpop.f32.mrb[8].mxu0 }
 0x50c   : > { %v1536_v50 = vpop.f32.mrb[9].mxu0 }
 0x50f   : > { %v1156_v51 = vpop.f32.mrb[10].mxu0 }
 0x510   : > { %v1546_v52 = vpop.f32.mrb[11].mxu0  ;;  %v1160_v53 = vsel %vm368_vm1, %v1156_v51, -inf }
 0x511   : > { %1161 = vmax.xlane.f32.xlu0 %v1160_v53 }
 0x544   : > { %v765_v55 = vpop.f32.mrb[2].mxu1 }
 0x545   : > { %v1521_v56 = vpop.f32.mrb[3].mxu1  ;;  %1525 = vmatmul.mubr.msk.f32.vlgmr.msra.gmra.mrb[0].mxu1 %vm368_vm1, %v765_v55 }
 0x546   : > { %1538 = vmatpush3.msra.mxu1 %v357_v54  ;;  %1539 = vmatprep.mubr.msk.f32.mxu1 %vm1604_vm0, %v1603_v0 }
 0x547   : > { %1547 = vmatprep.subr.mxu1 %v1603_v0 }
 0x54d   : > { %1540 = vmatmul.mubr.msk.f32.vlgmr.msra.gmra.mrb[0].mxu1 %vm368_vm1, %v1004_v49 }
 0x54e   : > { %1549 = vmatprep.mubr.msk.f32.mxu1 %vm1604_vm0, %v1603_v0 }
 0x59e   : > { %v1162_v57 = vpop.xlane.xlu0 %1161 }
 0x59f   : > { %v1163_v58 = vsub.f32 %v1156_v51, %v1162_v57 }
 0x5a1   : > { %v1164_v59 = vmul.f32 1.442695, %v1163_v58 }
 0x5a3   : > { %1589 = vpow2.f32 %v1164_v59 }
 0x5ad   : > { %v1590_v60 = vpop.eup %1589 }
 0x5ae   : > { %v1166_v61 = vsel %vm368_vm1, %v1590_v60, 0.0 }
 0x5af   : > { %1167 = vadd.xlane.f32.xlu0 %v1166_v61 }
 0x5c5   : > { %1171 = vrot.lane.b32.xlu0 %v1695_v11, %s1607_s21 }
 0x63c   : > { %v1168_v62 = vpop.xlane.xlu0 %1167 }
 0x63d   : > { %1591 = vrcp.f32 %v1168_v62 }
 0x640   : > { %v1172_v63 = vpop.permute.xlu0 %1171 }
 0x641   : > { %1548 = vmatpush3.msra.mxu1 %v1172_v63 }
 0x642   : > { %1552 = vmatprep.subr.mxu1 %v1603_v0 }
 0x647   : > { %v1592_v1 = vpop.eup %1591 }
 0x648   : > { %v1170_v2 = vmul.f32 %v1592_v1, %v1590_v60 }
 0x64a   : > { %1550 = vmatmul.mubr.msk.f32.vlgmr.msra.gmra.mrb[4].mxu1 %vm368_vm1, %v1170_v2 }
 0x64b   : > { %1553 = vmatpush3.msra.mxu1 %v358_v3  ;;  %1554 = vmatprep.mubr.msk.f32.mxu1 %vm1604_vm0, %v1603_v0 }
 0x71d   : > { %v1243_v4 = vpop.f32.mrb[4].mxu1 }
 0x71e   : > { %v1551_v5 = vpop.f32.mrb[5].mxu1  ;;  %1555 = vmatmul.mubr.msk.f32.vlgmr.msra.gmra.mrb[0].mxu1 %vm368_vm1, %v1243_v4 }
 0x7f1   : > { %v1316_v9 = vpop.f32.mrb[0].mxu1 }
 0x7f2   : > { %v1557_v10 = vadd.f32 %v1316_v9, %v367_v8  ;;  %v1556_v11 = vpop.f32.mrb[1].mxu1 }
 0x7f4   : > { %v1324_v0 = vsel %vm1323_vm2, %v1557_v10, 0.0 }
 0x7f5   : > { %1325 = vadd.xlane.f32.xlu1 %v1324_v0 }
 0x882   : > { %v1326_v12 = vpop.xlane.xlu1 %1325 }
 0x883   : > { %v1328_v13 = vmul.f32 0.03125, %v1326_v12 }
 0x885   : > { %v1329_v14 = vsub.f32 %v1557_v10, %v1328_v13 }
 0x887   : > { %v1330_v15 = vmul.f32 %v1329_v14, %v1329_v14 }
 0x889   : > { %v1331_v16 = vsel %vm1323_vm2, %v1330_v15, 0.0 }
 0x88a   : > { %1332 = vadd.xlane.f32.xlu0 %v1331_v16 }
 0x917   : > { %v1333_v17 = vpop.xlane.xlu0 %1332 }
 0x918   : > { %v1334_v18 = vmul.f32 0.03125, %v1333_v17 }
 0x91a   : > { %v1335_v19 = vadd.f32 1e-05, %v1334_v18 }
 0x91c   : > { %1593 = vrsqrt.f32 %v1335_v19 }
 0x926   : > { %v1594_v20 = vpop.eup %1593 }
 0x927   : > { %v1337_v22 = vmul.f32 %v1594_v20, %v1329_v14 }
 0x929   : > { %v1344_v24 = vmul.f32 %v1469_v21, %v1337_v22 }
 0x92b   : > { %v1351_v25 = vadd.f32 %v1470_v23, %v1344_v24 }
 0x92d   : > { %1352 = vst.msk [vmem:[%s351_s19] sm:$0xff] %vm1323_vm2, %v1351_v25 }
 0x92e PF: > { %s18_s27 = sadd.s32 1, %s1601_s27  }
 0x92f   : > { %p15_p4 = scmp.ge.s32.totalorder %s18_s27, 4  }
 0x931   :  { %17 = sbr.rel (!%p15_p4) target bundleno = 1 (0x1), region = 91 }

// kernel: decoder_forward.18
= control target key start
LH: loop header
LB: loop body
LE: loop exit
PB: predicated region body
PF: predicated region fallthrough
CT: control target
= control target key end

     0   :  { %vm39_vm0 = vcmask 261120   ;;  %vm131_vm1 = vcmask 523264   ;;  %s465_s1 = inlined_call_operand.vmem [shape: f32[32,64], index: 1, kind: input, shape index: {}]   ;;  %s466_s0 = inlined_call_operand.vmem [shape: f32[16,32], index: 0, kind: input, shape index: {}]   ;;  %s467_s3 = inlined_call_operand.vmem [shape: f32[64,32], index: 3, kind: input, shape index: {}]   ;;  %s468_s2 = inlined_call_operand.vmem [shape: f32[1,64], index: 2, kind: input, shape index: {}]   ;;  %s469_s4 = inlined_call_operand.vmem [shape: f32[1,32], index: 4, kind: input, shape index: {}]   ;;  %s470_s5 = inlined_call_operand.vmem [shape: f32[1,32], index: 5, kind: input, shape index: {}]   ;;  %s471_s6 = inlined_call_operand.vmem [shape: f32[1,32], index: 6, kind: input, shape index: {}]   ;;  %s472_s7 = inlined_call_operand.vmem [shape: f32[16,32], index: 7, kind: output, shape index: {}]  }
   0x1   :  { %v28_v0 = vld [vmem:[%s465_s1] sm:$0xff]  ;;  %v29_v1 = vld [vmem:[%s465_s1 + $0x8] sm:$0xff]  ;;  %v30_v2 = vld [vmem:[%s465_s1 + $0x10] sm:$0xff] }
   0x2   :  { %v329_v3 = vpack.c.bf16 %v29_v1, %v28_v0  ;;  %v31_v4 = vld [vmem:[%s465_s1 + $0x18] sm:$0xff]  ;;  %v26_v5 = vld [vmem:[%s466_s0] sm:$0xff]  ;;  %v124_v8 = vld [vmem:[%s467_s3 + $0x8] sm:$0xff] }
   0x3   :  { %v333_v6 = vpack.c.bf16 %v31_v4, %v30_v2  ;;  %307 = vmatprep.mubr.msk.f32.mxu0 %vm39_vm0, %v26_v5  ;;  %v123_v7 = vld [vmem:[%s467_s3] sm:$0xff]  ;;  %v125_v9 = vld [vmem:[%s467_s3 + $0x10] sm:$0xff]  ;;  %v126_v11 = vld [vmem:[%s467_s3 + $0x18] sm:$0xff] }
   0x4   :  { %330 = vmatprep.subr.bf16.mxu0 %v329_v3  ;;  %v337_v10 = vpack.c.bf16 %v124_v8, %v123_v7  ;;  %v341_v12 = vpack.c.bf16 %v126_v11, %v125_v9  ;;  %v127_v13 = vld [vmem:[%s467_s3 + $0x20] sm:$0xff]  ;;  %v128_v14 = vld [vmem:[%s467_s3 + $0x28] sm:$0xff]  ;;  %v129_v17 = vld [vmem:[%s467_s3 + $0x30] sm:$0xff] }
   0x5   :  { %332 = vmatpush3.bf16.msra.mxu0 %v329_v3  ;;  %v345_v15 = vpack.c.bf16 %v128_v14, %v127_v13  ;;  %v27_v16 = vld [vmem:[%s466_s0 + $0x8] sm:$0xff]  ;;  %v130_v18 = vld [vmem:[%s467_s3 + $0x38] sm:$0xff]  ;;  %v275_v20 = vld [vmem:[%s468_s2] ss:$0 sm:$0xff] }
   0x6   :  { %334 = vmatprep.subr.bf16.mxu0 %v333_v6  ;;  %338 = vmatprep.subr.bf16.mxu1 %v337_v10  ;;  %v349_v19 = vpack.c.bf16 %v130_v18, %v129_v17  ;;  %v280_v29 = vld [vmem:[%s469_s4] ss:$0 sm:$0xff] }
   0x7   :  { %340 = vmatpush3.bf16.msra.mxu1 %v337_v10  ;;  %v281_v53 = vld [vmem:[%s470_s5] ss:$0 sm:$0xff] }
   0x8   :  { %342 = vmatprep.subr.bf16.mxu1 %v341_v12  ;;  %v282_v55 = vld [vmem:[%s471_s6] ss:$0 sm:$0xff] }
   0x9   :  { %336 = vmatpush3.bf16.msra.mxu0 %v333_v6 }
   0xb   :  { %344 = vmatpush3.bf16.msra.mxu1 %v341_v12 }
   0xc   :  { %308 = vmatmul.mubr.msk.f32.vlgmr.msra.gmra.mrb[0].mxu0 %vm39_vm0, %v27_v16  ;;  %346 = vmatprep.subr.bf16.mxu1 %v345_v15 }
   0xf   :  { %348 = vmatpush3.bf16.msra.mxu1 %v345_v15 }
  0x10   :  { %350 = vmatprep.subr.bf16.mxu1 %v349_v19 }
  0x13   :  { %352 = vmatpush3.bf16.msra.mxu1 %v349_v19 }
  0xdf   :  { %v309_v21 = vpop.f32.mrb[0].mxu0 }
  0xe0   :  { %v118_v22 = vadd.f32 %v309_v21, %v275_v20  ;;  %v112_v23 = vpop.f32.mrb[1].mxu0 }
  0xe1   :  { %v113_v24 = vadd.f32 %v275_v20, %v112_v23 }
  0xe2   :  { %v122_v26 = vmax.f32 %v118_v22, 0.0 }
  0xe3   :  { %v121_v25 = vmax.f32 %v113_v24, 0.0 }
  0xe5   :  { %326 = vmatprep.mubr.msk.f32.mxu1 %vm131_vm1, %v121_v25 }
  0xe6   :  { %327 = vmatmul.mubr.msk.f32.vlgmr.msra.gmra.mrb[0].mxu1 %vm131_vm1, %v122_v26 }
 0x1b9   :  { %v328_v27 = vpop.f32.mrb[0].mxu1 }
 0x1ba   :  { %v204_v28 = vpop.f32.mrb[1].mxu1  ;;  %v214_v30 = vadd.f32 %v328_v27, %v27_v16 }
 0x1bb   :  { %v213_v31 = vadd.f32 %v204_v28, %v26_v5 }
 0x1bc   :  { %v223_v34 = vadd.f32 %v280_v29, %v214_v30 }
 0x1bd   :  { %v222_v32 = vadd.f32 %v280_v29, %v213_v31 }
 0x1be   :  { %v229_v35 = vsel %vm39_vm0, %v223_v34, 0.0 }
 0x1bf   :  { %v226_v33 = vsel %vm39_vm0, %v222_v32, 0.0 }
 0x1c0   :  { %227 = vadd.xlane.f32.xlu0 %v226_v33 }
 0x1c4   :  { %230 = vadd.xlane.f32.xlu0 %v229_v35 }
 0x24d   :  { %v228_v36 = vpop.xlane.xlu0 %227 }
 0x24e   :  { %v233_v37 = vmul.f32 0.03125, %v228_v36 }
 0x250   :  { %v235_v38 = vsub.f32 %v222_v32, %v233_v37 }
 0x251   :  { %v231_v39 = vpop.xlane.xlu0 %230 }
 0x252   :  { %v234_v40 = vmul.f32 0.03125, %v231_v39  ;;  %v237_v41 = vmul.f32 %v235_v38, %v235_v38 }
 0x254   :  { %v236_v42 = vsub.f32 %v223_v34, %v234_v40  ;;  %v239_v43 = vsel %vm39_vm0, %v237_v41, 0.0 }
 0x255   :  { %240 = vadd.xlane.f32.xlu1 %v239_v43 }
 0x256   :  { %v238_v44 = vmul.f32 %v236_v42, %v236_v42 }
 0x258   :  { %v242_v45 = vsel %vm39_vm0, %v238_v44, 0.0 }
 0x259   :  { %243 = vadd.xlane.f32.xlu1 %v242_v45 }
 0x2e2   :  { %v241_v46 = vpop.xlane.xlu1 %240 }
 0x2e3   :  { %v245_v47 = vmul.f32 0.03125, %v241_v46 }
 0x2e5   :  { %v247_v48 = vadd.f32 1e-05, %v245_v47 }
 0x2e6   :  { %v244_v49 = vpop.xlane.xlu1 %243 }
 0x2e7   :  { %353 = vrsqrt.f32 %v247_v48  ;;  %v246_v50 = vmul.f32 0.03125, %v244_v49 }
 0x2e9   :  { %v248_v51 = vadd.f32 1e-05, %v246_v50 }
 0x2eb   :  { %355 = vrsqrt.f32 %v248_v51 }
 0x2f1   :  { %v354_v52 = vpop.eup %353 }
 0x2f2   :  { %v251_v54 = vmul.f32 %v354_v52, %v235_v38 }
 0x2f4   :  { %v259_v56 = vmul.f32 %v281_v53, %v251_v54 }
 0x2f5   :  { %v356_v57 = vpop.eup %355 }
 0x2f6   :  { %v267_v58 = vadd.f32 %v282_v55, %v259_v56  ;;  %v252_v59 = vmul.f32 %v356_v57, %v236_v42 }
 0x2f8   :  { %269 = vst.msk [vmem:[%s472_s7] sm:$0xff] %vm39_vm0, %v267_v58  ;;  %v260_v60 = vmul.f32 %v281_v53, %v252_v59 }
 0x2fa   :  { %v268_v61 = vadd.f32 %v282_v55, %v260_v60 }
 0x2fc   :  { %270 = vst.msk [vmem:[%s472_s7 + $0x8] sm:$0xff] %vm39_vm0, %v268_v61 }

// kernel: decoder_forward.25
= control target key start
LH: loop header
LB: loop body
LE: loop exit
PB: predicated region body
PF: predicated region fallthrough
CT: control target
= control target key end

     0   :  { %vm19_vm0 = vcmask 261120   ;;  %s167_s0 = inlined_call_operand.vmem [shape: f32[16,32], index: 0, kind: input, shape index: {}]   ;;  %s168_s1 = inlined_call_operand.vmem [shape: f32[1,32], index: 1, kind: input, shape index: {}]   ;;  %s169_s2 = inlined_call_operand.vmem [shape: f32[1,32], index: 2, kind: input, shape index: {}]   ;;  %s170_s3 = inlined_call_operand.hbm [shape: f32[16,32], index: 3, kind: output, shape index: {}]  }
   0x1   :  { %v15_v0 = vld [vmem:[%s167_s0] sm:$0xff]  ;;  %v16_v1 = vld [vmem:[%s167_s0 + $0x8] sm:$0xff] }
   0x2   :  { %8 = vsyncpa [#allocation3], 0  ;;  %v20_v2 = vsel %vm19_vm0, %v15_v0, 0.0  ;;  %v23_v3 = vsel %vm19_vm0, %v16_v1, 0.0  ;;  %v81_v21 = vld [vmem:[%s168_s1] ss:$0 sm:$0xff] }
   0x3   :  { %21 = vadd.xlane.f32.xlu0 %v20_v2  ;;  %v82_v23 = vld [vmem:[%s169_s2] ss:$0 sm:$0xff]  ;;  %s114_s19 = smov [#allocation2]  }
   0x4   :  { %s70_s20 = sshll.u32 %s114_s19, 4  ;;  %s71_s20 = int_to_ptr.vmem [resolvable:$true] %s70_s20 }
   0x5   :  { %s90_s21 = scalar_lea.vmem %s71_s20, 256  ;;  %p95_p1 = scmp.lt.s32.totalorder %s71_s20, %s71_s20 }
   0x6   :  { %p91_p0 = scmp.ne.s32.totalorder %s71_s20, %s90_s21  ;;  %p96_p2 = scmp.lt.s32.totalorder %s90_s21, %s90_s21 }
   0x7   :  { %24 = vadd.xlane.f32.xlu0 %v23_v3 }
   0x8   :  { %p97_p3 = por %p96_p2, %p95_p1 }
   0xa   :  { %p98_p4 = pnand %p97_p3, %p91_p0 }
  0x90   :  { %v22_v4 = vpop.xlane.xlu0 %21 }
  0x91   :  { %v27_v5 = vmul.f32 0.03125, %v22_v4 }
  0x93   :  { %v29_v6 = vsub.f32 %v15_v0, %v27_v5 }
  0x94   :  { %v25_v7 = vpop.xlane.xlu0 %24 }
  0x95   :  { %v28_v8 = vmul.f32 0.03125, %v25_v7  ;;  %v31_v9 = vmul.f32 %v29_v6, %v29_v6 }
  0x97   :  { %v30_v10 = vsub.f32 %v16_v1, %v28_v8  ;;  %v33_v11 = vsel %vm19_vm0, %v31_v9, 0.0 }
  0x98   :  { %34 = vadd.xlane.f32.xlu1 %v33_v11 }
  0x99   :  { %v32_v12 = vmul.f32 %v30_v10, %v30_v10 }
  0x9b   :  { %v36_v13 = vsel %vm19_vm0, %v32_v12, 0.0 }
  0x9c   :  { %37 = vadd.xlane.f32.xlu1 %v36_v13 }
 0x125   :  { %v35_v14 = vpop.xlane.xlu1 %34 }
 0x126   :  { %v39_v15 = vmul.f32 0.03125, %v35_v14 }
 0x128   :  { %v41_v16 = vadd.f32 1e-05, %v39_v15 }
 0x129   :  { %v38_v17 = vpop.xlane.xlu1 %37 }
 0x12a   :  { %86 = vrsqrt.f32 %v41_v16  ;;  %v40_v18 = vmul.f32 0.03125, %v38_v17 }
 0x12c   :  { %v42_v19 = vadd.f32 1e-05, %v40_v18 }
 0x12e   :  { %88 = vrsqrt.f32 %v42_v19 }
 0x134   :  { %v87_v20 = vpop.eup %86 }
 0x135   :  { %v45_v22 = vmul.f32 %v87_v20, %v29_v6 }
 0x137   :  { %v53_v24 = vmul.f32 %v81_v21, %v45_v22 }
 0x138   :  { %v89_v25 = vpop.eup %88 }
 0x139   :  { %v46_v26 = vmul.f32 %v89_v25, %v30_v10  ;;  %v61_v27 = vadd.f32 %v82_v23, %v53_v24 }
 0x13b   :  { %v54_v28 = vmul.f32 %v81_v21, %v46_v26  ;;  %63 = vst.msk [vmem:[#allocation2] sm:$0xff] %vm19_vm0, %v61_v27 }
 0x13d   :  { %v62_v29 = vadd.f32 %v82_v23, %v54_v28 }
 0x13f   :  { %64 = vst.msk [vmem:[#allocation2 + $0x8] sm:$0xff] %vm19_vm0, %v62_v29 }
 0x140   :  { %101 = shalt.err (!%p98_p4)
}
 0x141   :  { %s102_s22 = scalar_lea.hbm %s170_s3, 256 }
 0x142   :  { %p103_p5 = scmp.ne.s32.totalorder %s170_s3, %s102_s22  ;;  %p106_p6 = scmp.lt.u32.totalorder %s102_s22, %s170_s3 }
 0x144   :  { %p108_p7 = pnand %p106_p6, %p103_p5 }
 0x146   :  { %111 = shalt.err (!%p108_p7)
}
 0x147   :  { %s115_s27 = smov 128   ;;  %s116_s28 = smov 8  }
 0x148   :  { %76 = dma.vmem_to_hbm [thread:$0]  %s71_s20, 256, %s170_s3, [#allocation3], %s115_s27, %s115_s27, %s116_s28  }
 0x149   :  { %112 = dma.done.wait [#allocation3], 256  }
 0x14a   :  { %113 = vsyncadd [#allocation3], 4294967040 }
 0x14b   :  { %80 = vsyncpa [#allocation3], 1 }

</bundles_post_ra>
